<compile_context>
chip_gen: v5e
topology: v5e:2x2
jax: 0.10.0
libtpu: 0.0.40
codegen_flags: <defaults>
</compile_context>

<pallas_src>
import jax
import jax.numpy as jnp
import numpy as np
from jax.experimental import pallas as pl
from jax.experimental.pallas import tpu as pltpu


# ----------------------------- conv2 output shifts -----------------------------
def _shift_h(d, dh, zero_row):
    # res[y] = d[y + dh] inside the band, zero outside ("same" padding along H).
    if dh == 0:
        return d
    if dh == 1:
        return jnp.concatenate([d[1:], zero_row], axis=0)
    return jnp.concatenate([zero_row, d[:-1]], axis=0)


def _shift_w(d, dw, zero_col):
    # res[:, x] = d[:, x + dw] inside the band, zero outside ("same" padding along W).
    if dw == 0:
        return d
    if dw == 1:
        return jnp.concatenate([d[:, 1:], zero_col], axis=1)
    return jnp.concatenate([zero_col, d[:, :-1]], axis=1)


# ----------------------------- Pallas kernel -----------------------------------
def bottleneck_kernel(x_ref, w1_ref, b1_ref, w2_ref, b2_ref, w3_ref, b3_ref, o_ref):
    _, H, W, Cin = x_ref.shape
    Cb = w1_ref.shape[1]
    Cout = w3_ref.shape[1]
    P = H * W

    # Grid-constant weights / folded-BN biases (VMEM resident across the grid).
    w1 = w1_ref[...]            # (Cin, Cb)       bf16
    w2 = w2_ref[...]            # (3, 3, Cb, Cb)  bf16 (HWIO)
    w3 = w3_ref[...]            # (Cb, Cout)      bf16
    b1 = b1_ref[...]            # (1, Cb)   f32
    b2 = b2_ref[...]            # (1, Cb)   f32
    b3 = b3_ref[...]            # (1, Cout) f32

    # ---- conv1 (1x1) + folded-BN bias + relu --------------------------------------
    xb = x_ref[...].reshape(P, Cin).astype(jnp.bfloat16)
    t1 = jnp.dot(xb, w1, preferred_element_type=jnp.float32)
    t1 = jnp.maximum(t1 + b1, 0.0).astype(jnp.bfloat16)     # (P, Cb), register resident

    # ---- conv2 (3x3, stride 1, pad 1) ----------------------------------------------
    # out[y, x] = sum_{dh,dw in {-1,0,1}} t1[y+dh, x+dw] @ w2[dh+1, dw+1]   (zeros outside)
    # 9 MXU dots on the same lhs; spatial offsets applied to the outputs with
    # boundary-zero shifts: 6 outer-dim shifts (H) + 2 sublane shifts (W) per step.
    zero_row = jnp.zeros((1, W, Cb), jnp.float32)
    zero_col = jnp.zeros((H, 1, Cb), jnp.float32)
    acc = None
    for dw in (-1, 0, 1):
        part = None
        for dh in (-1, 0, 1):
            d = jnp.dot(t1, w2[dh + 1, dw + 1], preferred_element_type=jnp.float32)
            d = _shift_h(d.reshape(H, W, Cb), dh, zero_row)
            part = d if part is None else part + d
        part = _shift_w(part, dw, zero_col)
        acc = part if acc is None else acc + part
    t2 = jnp.maximum(acc.reshape(P, Cb) + b2, 0.0)           # (P, Cb) f32

    # ---- conv3 (1x1) + bias, identity shortcut, relu -------------------------------
    t3 = jnp.dot(t2.astype(jnp.bfloat16), w3, preferred_element_type=jnp.float32) + b3
    x_res = x_ref[...].reshape(P, Cout)   # fresh load; don't pin the f32 x tile across conv2
    o_ref[...] = jnp.maximum(t3 + x_res, 0.0).reshape(1, H, W, Cout)


# ------------------------------- wrappers ---------------------------------------
def bottleneck_block_nhwc(x_nhwc, params):
    """Fused bottleneck block. x_nhwc: (N, H, W, Cin) f32 -> (N, H, W, Cout) f32."""
    w1, b1, w2, b2, w3, b3 = params
    N, H, W, Cin = x_nhwc.shape
    Cb = w1.shape[1]
    Cout = w3.shape[1]
    assert Cin == Cout, "only the identity-shortcut path (in_channel == out_channel)"

    # bf16 MXU operands (accumulation stays f32 inside the kernel).
    w1b, w2b, w3b = (w.astype(jnp.bfloat16) for w in (w1, w2, w3))

    flops = 2 * N * H * W * (Cin * Cb + 9 * Cb * Cb + Cb * Cout)
    bytes_accessed = ((x_nhwc.size + N * H * W * Cout) * 4
                      + 2 * (w1b.size + w2b.size + w3b.size))

    return pl.pallas_call(
        bottleneck_kernel,
        out_shape=jax.ShapeDtypeStruct((N, H, W, Cout), jnp.float32),
        grid=(N,),
        in_specs=[
            pl.BlockSpec((1, H, W, Cin), lambda n: (n, 0, 0, 0)),    # one image per step
            pl.BlockSpec((Cin, Cb), lambda n: (0, 0)),               # w1 (grid constant)
            pl.BlockSpec((1, Cb), lambda n: (0, 0)),                 # b1
            pl.BlockSpec((3, 3, Cb, Cb), lambda n: (0, 0, 0, 0)),    # w2
            pl.BlockSpec((1, Cb), lambda n: (0, 0)),                 # b2
            pl.BlockSpec((Cb, Cout), lambda n: (0, 0)),              # w3
            pl.BlockSpec((1, Cout), lambda n: (0, 0)),               # b3
        ],
        out_specs=pl.BlockSpec((1, H, W, Cout), lambda n: (n, 0, 0, 0)),  # lane-dense store
        compiler_params=pltpu.CompilerParams(
            dimension_semantics=("parallel",),        # megacore sharding over images (v7x)
            vmem_limit_bytes=32 * 1024 * 1024,        # ample here; re-derive per chip at real widths
        ),
        cost_estimate=pl.CostEstimate(flops=flops, transcendentals=0,
                                      bytes_accessed=bytes_accessed),
    )(x_nhwc, w1b, b1, w2b, b2, w3b, b3)


def bottleneck_block_nchw(x_nchw, params):
    """PyTorch-layout adapter (NCHW in/out).  Prefer the NHWC entry point: each
    transpose here is a full extra HBM read+write of the activation."""
    y = bottleneck_block_nhwc(jnp.transpose(x_nchw, (0, 2, 3, 1)), params)
    return jnp.transpose(y, (0, 3, 1, 2))


# -------------------------- pure-JAX reference ----------------------------------
def ref_forward_nhwc(x, params):
    """Reference with matching numerics (bf16 matmul operands, f32 accumulation)."""
    w1, b1, w2, b2, w3, b3 = params
    dn = ("NHWC", "HWIO", "NHWC")
    bf = lambda a: a.astype(jnp.bfloat16)
    t = jax.lax.conv_general_dilated(bf(x), bf(w1).reshape(1, 1, *w1.shape), (1, 1), "VALID",
                                     dimension_numbers=dn, preferred_element_type=jnp.float32)
    t = jnp.maximum(t + b1, 0.0)
    t = jax.lax.conv_general_dilated(bf(t), bf(w2), (1, 1), ((1, 1), (1, 1)),
                                     dimension_numbers=dn, preferred_element_type=jnp.float32)
    t = jnp.maximum(t + b2, 0.0)
    t = jax.lax.conv_general_dilated(bf(t), bf(w3).reshape(1, 1, *w3.shape), (1, 1), "VALID",
                                     dimension_numbers=dn, preferred_element_type=jnp.float32)
    t = t + b3
    return jnp.maximum(t + x, 0.0)


# ---------------------------- parameter setup ------------------------------------
def fold_bn(w, gamma, beta, mean, var, eps=1e-5):
    """Fold eval-mode BN into the conv weight (scale) and a per-channel bias."""
    s = gamma / jnp.sqrt(var + eps)                       # (Cout,)
    w_folded = (w * s).astype(jnp.float32)                # output channels = last axis
    b_folded = (beta - mean * s).reshape(1, -1).astype(jnp.float32)
    return w_folded, b_folded


def make_params(key, in_channel, out_channel):
    assert in_channel == out_channel, "identity-shortcut configuration only"
    cb = out_channel // 4
    ks = jax.random.split(key, 15)

    # Conv weights: 1x1 as (Cin, Cout) matrices, 3x3 as HWIO.
    w1 = 0.1 * jax.random.normal(ks[0], (in_channel, cb), jnp.float32)
    w2 = 0.1 * jax.random.normal(ks[1], (3, 3, cb, cb), jnp.float32)
    w3 = 0.1 * jax.random.normal(ks[2], (cb, out_channel), jnp.float32)

    def bn(kg, kb, km, kv, c):
        gamma = 0.5 + jax.random.uniform(kg, (c,), jnp.float32)
        beta = 0.1 * jax.random.normal(kb, (c,), jnp.float32)
        mean = 0.1 * jax.random.normal(km, (c,), jnp.float32)
        var = 0.5 + jax.random.uniform(kv, (c,), jnp.float32)
        return gamma, beta, mean, var

    w1f, b1 = fold_bn(w1, *bn(ks[3], ks[4], ks[5], ks[6], cb))
    w2f, b2 = fold_bn(w2, *bn(ks[7], ks[8], ks[9], ks[10], cb))
    w3f, b3 = fold_bn(w3, *bn(ks[11], ks[12], ks[13], ks[14], out_channel))
    return (w1f, b1, w2f, b2, w3f, b3)


# --------------------------------- main -------------------------------------------
if __name__ == "__main__":
    key = jax.random.PRNGKey(0)
    k_x, k_p = jax.random.split(key)

    # in_channel == out_channel == 128 (bottleneck 32).  Equivalent PyTorch NCHW
    # input: (2, 128, 16, 16).
    N, H, W, C = 2, 16, 16, 128
    x = jax.random.normal(k_x, (N, H, W, C), jnp.float32)
    params = make_params(k_p, C, C)

    fwd = jax.jit(bottleneck_block_nhwc)
    out = jax.block_until_ready(fwd(x, params))

    # Correctness check (bf16 operand rounding -> loose-ish tolerance).
    ref = ref_forward_nhwc(x, params)
    np.testing.assert_allclose(np.asarray(out), np.asarray(ref), rtol=1e-2, atol=1e-2)

    print("KERNEL_OK")
</pallas_src>

<mosaic_0001>
module attributes {stable_mosaic.version = 11 : i64} {
  func.func @bottleneck_kernel(%arg0: i32, %arg1: memref<1x16x16x128xf32, #tpu.memory_space<vmem>>, %arg2: memref<128x32xbf16, #tpu.memory_space<vmem>>, %arg3: memref<1x32xf32, #tpu.memory_space<vmem>>, %arg4: memref<3x3x32x32xbf16, #tpu.memory_space<vmem>>, %arg5: memref<1x32xf32, #tpu.memory_space<vmem>>, %arg6: memref<32x128xbf16, #tpu.memory_space<vmem>>, %arg7: memref<1x128xf32, #tpu.memory_space<vmem>>, %arg8: memref<1x16x16x128xf32, #tpu.memory_space<vmem>>) attributes {dimension_semantics = [#tpu.dimension_semantics<parallel>], iteration_bounds = array<i64: 2>, scalar_prefetch = 0 : i64, scratch_operands = 0 : i64, tpu.core_type = #tpu.core_type<tc>, window_params = [{transform_indices = @transform_0, window_bounds = array<i64: 1, 16, 16, 128>}, {pipeline_mode = #tpu.pipeline_mode<synchronous>, transform_indices = @transform_1, window_bounds = array<i64: 128, 32>}, {pipeline_mode = #tpu.pipeline_mode<synchronous>, transform_indices = @transform_2, window_bounds = array<i64: 1, 32>}, {pipeline_mode = #tpu.pipeline_mode<synchronous>, transform_indices = @transform_3, window_bounds = array<i64: 3, 3, 32, 32>}, {pipeline_mode = #tpu.pipeline_mode<synchronous>, transform_indices = @transform_4, window_bounds = array<i64: 1, 32>}, {pipeline_mode = #tpu.pipeline_mode<synchronous>, transform_indices = @transform_5, window_bounds = array<i64: 32, 128>}, {pipeline_mode = #tpu.pipeline_mode<synchronous>, transform_indices = @transform_6, window_bounds = array<i64: 1, 128>}, {transform_indices = @transform_7, window_bounds = array<i64: 1, 16, 16, 128>}]} {
    %c0 = arith.constant 0 : index
    %c0_0 = arith.constant 0 : index
    %0 = vector.load %arg2[%c0, %c0_0] : memref<128x32xbf16, #tpu.memory_space<vmem>>, vector<128x32xbf16>
    %c0_1 = arith.constant 0 : index
    %c0_2 = arith.constant 0 : index
    %c0_3 = arith.constant 0 : index
    %c0_4 = arith.constant 0 : index
    %1 = vector.load %arg4[%c0_1, %c0_2, %c0_3, %c0_4] : memref<3x3x32x32xbf16, #tpu.memory_space<vmem>>, vector<3x3x32x32xbf16>
    %c0_5 = arith.constant 0 : index
    %c0_6 = arith.constant 0 : index
    %2 = vector.load %arg6[%c0_5, %c0_6] : memref<32x128xbf16, #tpu.memory_space<vmem>>, vector<32x128xbf16>
    %c0_7 = arith.constant 0 : index
    %c0_8 = arith.constant 0 : index
    %3 = vector.load %arg3[%c0_7, %c0_8] : memref<1x32xf32, #tpu.memory_space<vmem>>, vector<1x32xf32>
    %c0_9 = arith.constant 0 : index
    %c0_10 = arith.constant 0 : index
    %4 = vector.load %arg5[%c0_9, %c0_10] : memref<1x32xf32, #tpu.memory_space<vmem>>, vector<1x32xf32>
    %c0_11 = arith.constant 0 : index
    %c0_12 = arith.constant 0 : index
    %5 = vector.load %arg7[%c0_11, %c0_12] : memref<1x128xf32, #tpu.memory_space<vmem>>, vector<1x128xf32>
    %c0_13 = arith.constant 0 : index
    %c0_14 = arith.constant 0 : index
    %c0_15 = arith.constant 0 : index
    %c0_16 = arith.constant 0 : index
    %6 = vector.load %arg1[%c0_13, %c0_14, %c0_15, %c0_16] : memref<1x16x16x128xf32, #tpu.memory_space<vmem>>, vector<1x16x16x128xf32>
    %7 = vector.shape_cast %6 : vector<1x16x16x128xf32> to vector<256x128xf32>
    %8 = arith.truncf %7 : vector<256x128xf32> to vector<256x128xbf16>
    %cst = arith.constant dense<0.000000e+00> : vector<256x32xf32>
    %9 = tpu.matmul %8, %0, %cst {dimension_numbers = #tpu.dot_dimension_numbers<[1], [0], [0], [1], [0, 0, 1, 1], [], []>} : vector<256x128xbf16>, vector<128x32xbf16>, vector<256x32xf32> -> vector<256x32xf32>
    %10 = vector.broadcast %3 : vector<1x32xf32> to vector<256x32xf32>
    %11 = arith.addf %9, %10 : vector<256x32xf32>
    %cst_17 = arith.constant 0.000000e+00 : f32
    %12 = vector.broadcast %cst_17 : f32 to vector<256x32xf32>
    %13 = arith.maximumf %11, %12 : vector<256x32xf32>
    %14 = arith.truncf %13 : vector<256x32xf32> to vector<256x32xbf16>
    %cst_18 = arith.constant 0.000000e+00 : f32
    %15 = vector.broadcast %cst_18 : f32 to vector<1x16x32xf32>
    %cst_19 = arith.constant 0.000000e+00 : f32
    %16 = vector.broadcast %cst_19 : f32 to vector<16x1x32xf32>
    %17 = vector.extract_strided_slice %1 {offsets = [0, 0, 0, 0], sizes = [1, 1, 32, 32], strides = [1, 1, 1, 1]} : vector<3x3x32x32xbf16> to vector<1x1x32x32xbf16>
    %18 = vector.shape_cast %17 : vector<1x1x32x32xbf16> to vector<32x32xbf16>
    %cst_20 = arith.constant dense<0.000000e+00> : vector<256x32xf32>
    %19 = tpu.matmul %14, %18, %cst_20 {dimension_numbers = #tpu.dot_dimension_numbers<[1], [0], [0], [1], [0, 0, 1, 1], [], []>} : vector<256x32xbf16>, vector<32x32xbf16>, vector<256x32xf32> -> vector<256x32xf32>
    %20 = vector.shape_cast %19 : vector<256x32xf32> to vector<16x16x32xf32>
    %21 = vector.extract_strided_slice %20 {offsets = [0, 0, 0], sizes = [15, 16, 32], strides = [1, 1, 1]} : vector<16x16x32xf32> to vector<15x16x32xf32>
    %22 = tpu.concatenate %15, %21 in 0 : vector<1x16x32xf32>, vector<15x16x32xf32> -> vector<16x16x32xf32>
    %23 = vector.extract_strided_slice %1 {offsets = [1, 0, 0, 0], sizes = [1, 1, 32, 32], strides = [1, 1, 1, 1]} : vector<3x3x32x32xbf16> to vector<1x1x32x32xbf16>
    %24 = vector.shape_cast %23 : vector<1x1x32x32xbf16> to vector<32x32xbf16>
    %cst_21 = arith.constant dense<0.000000e+00> : vector<256x32xf32>
    %25 = tpu.matmul %14, %24, %cst_21 {dimension_numbers = #tpu.dot_dimension_numbers<[1], [0], [0], [1], [0, 0, 1, 1], [], []>} : vector<256x32xbf16>, vector<32x32xbf16>, vector<256x32xf32> -> vector<256x32xf32>
    %26 = vector.shape_cast %25 : vector<256x32xf32> to vector<16x16x32xf32>
    %27 = arith.addf %22, %26 : vector<16x16x32xf32>
    %28 = vector.extract_strided_slice %1 {offsets = [2, 0, 0, 0], sizes = [1, 1, 32, 32], strides = [1, 1, 1, 1]} : vector<3x3x32x32xbf16> to vector<1x1x32x32xbf16>
    %29 = vector.shape_cast %28 : vector<1x1x32x32xbf16> to vector<32x32xbf16>
    %cst_22 = arith.constant dense<0.000000e+00> : vector<256x32xf32>
    %30 = tpu.matmul %14, %29, %cst_22 {dimension_numbers = #tpu.dot_dimension_numbers<[1], [0], [0], [1], [0, 0, 1, 1], [], []>} : vector<256x32xbf16>, vector<32x32xbf16>, vector<256x32xf32> -> vector<256x32xf32>
    %31 = vector.shape_cast %30 : vector<256x32xf32> to vector<16x16x32xf32>
    %32 = vector.extract_strided_slice %31 {offsets = [1, 0, 0], sizes = [15, 16, 32], strides = [1, 1, 1]} : vector<16x16x32xf32> to vector<15x16x32xf32>
    %33 = tpu.concatenate %32, %15 in 0 : vector<15x16x32xf32>, vector<1x16x32xf32> -> vector<16x16x32xf32>
    %34 = arith.addf %27, %33 : vector<16x16x32xf32>
    %35 = vector.extract_strided_slice %34 {offsets = [0, 0, 0], sizes = [16, 15, 32], strides = [1, 1, 1]} : vector<16x16x32xf32> to vector<16x15x32xf32>
    %36 = tpu.concatenate %16, %35 in 1 : vector<16x1x32xf32>, vector<16x15x32xf32> -> vector<16x16x32xf32>
    %37 = vector.extract_strided_slice %1 {offsets = [0, 1, 0, 0], sizes = [1, 1, 32, 32], strides = [1, 1, 1, 1]} : vector<3x3x32x32xbf16> to vector<1x1x32x32xbf16>
    %38 = vector.shape_cast %37 : vector<1x1x32x32xbf16> to vector<32x32xbf16>
    %cst_23 = arith.constant dense<0.000000e+00> : vector<256x32xf32>
    %39 = tpu.matmul %14, %38, %cst_23 {dimension_numbers = #tpu.dot_dimension_numbers<[1], [0], [0], [1], [0, 0, 1, 1], [], []>} : vector<256x32xbf16>, vector<32x32xbf16>, vector<256x32xf32> -> vector<256x32xf32>
    %40 = vector.shape_cast %39 : vector<256x32xf32> to vector<16x16x32xf32>
    %41 = vector.extract_strided_slice %40 {offsets = [0, 0, 0], sizes = [15, 16, 32], strides = [1, 1, 1]} : vector<16x16x32xf32> to vector<15x16x32xf32>
    %42 = tpu.concatenate %15, %41 in 0 : vector<1x16x32xf32>, vector<15x16x32xf32> -> vector<16x16x32xf32>
    %43 = vector.extract_strided_slice %1 {offsets = [1, 1, 0, 0], sizes = [1, 1, 32, 32], strides = [1, 1, 1, 1]} : vector<3x3x32x32xbf16> to vector<1x1x32x32xbf16>
    %44 = vector.shape_cast %43 : vector<1x1x32x32xbf16> to vector<32x32xbf16>
    %cst_24 = arith.constant dense<0.000000e+00> : vector<256x32xf32>
    %45 = tpu.matmul %14, %44, %cst_24 {dimension_numbers = #tpu.dot_dimension_numbers<[1], [0], [0], [1], [0, 0, 1, 1], [], []>} : vector<256x32xbf16>, vector<32x32xbf16>, vector<256x32xf32> -> vector<256x32xf32>
    %46 = vector.shape_cast %45 : vector<256x32xf32> to vector<16x16x32xf32>
    %47 = arith.addf %42, %46 : vector<16x16x32xf32>
    %48 = vector.extract_strided_slice %1 {offsets = [2, 1, 0, 0], sizes = [1, 1, 32, 32], strides = [1, 1, 1, 1]} : vector<3x3x32x32xbf16> to vector<1x1x32x32xbf16>
    %49 = vector.shape_cast %48 : vector<1x1x32x32xbf16> to vector<32x32xbf16>
    %cst_25 = arith.constant dense<0.000000e+00> : vector<256x32xf32>
    %50 = tpu.matmul %14, %49, %cst_25 {dimension_numbers = #tpu.dot_dimension_numbers<[1], [0], [0], [1], [0, 0, 1, 1], [], []>} : vector<256x32xbf16>, vector<32x32xbf16>, vector<256x32xf32> -> vector<256x32xf32>
    %51 = vector.shape_cast %50 : vector<256x32xf32> to vector<16x16x32xf32>
    %52 = vector.extract_strided_slice %51 {offsets = [1, 0, 0], sizes = [15, 16, 32], strides = [1, 1, 1]} : vector<16x16x32xf32> to vector<15x16x32xf32>
    %53 = tpu.concatenate %52, %15 in 0 : vector<15x16x32xf32>, vector<1x16x32xf32> -> vector<16x16x32xf32>
    %54 = arith.addf %47, %53 : vector<16x16x32xf32>
    %55 = arith.addf %36, %54 : vector<16x16x32xf32>
    %56 = vector.extract_strided_slice %1 {offsets = [0, 2, 0, 0], sizes = [1, 1, 32, 32], strides = [1, 1, 1, 1]} : vector<3x3x32x32xbf16> to vector<1x1x32x32xbf16>
    %57 = vector.shape_cast %56 : vector<1x1x32x32xbf16> to vector<32x32xbf16>
    %cst_26 = arith.constant dense<0.000000e+00> : vector<256x32xf32>
    %58 = tpu.matmul %14, %57, %cst_26 {dimension_numbers = #tpu.dot_dimension_numbers<[1], [0], [0], [1], [0, 0, 1, 1], [], []>} : vector<256x32xbf16>, vector<32x32xbf16>, vector<256x32xf32> -> vector<256x32xf32>
    %59 = vector.shape_cast %58 : vector<256x32xf32> to vector<16x16x32xf32>
    %60 = vector.extract_strided_slice %59 {offsets = [0, 0, 0], sizes = [15, 16, 32], strides = [1, 1, 1]} : vector<16x16x32xf32> to vector<15x16x32xf32>
    %61 = tpu.concatenate %15, %60 in 0 : vector<1x16x32xf32>, vector<15x16x32xf32> -> vector<16x16x32xf32>
    %62 = vector.extract_strided_slice %1 {offsets = [1, 2, 0, 0], sizes = [1, 1, 32, 32], strides = [1, 1, 1, 1]} : vector<3x3x32x32xbf16> to vector<1x1x32x32xbf16>
    %63 = vector.shape_cast %62 : vector<1x1x32x32xbf16> to vector<32x32xbf16>
    %cst_27 = arith.constant dense<0.000000e+00> : vector<256x32xf32>
    %64 = tpu.matmul %14, %63, %cst_27 {dimension_numbers = #tpu.dot_dimension_numbers<[1], [0], [0], [1], [0, 0, 1, 1], [], []>} : vector<256x32xbf16>, vector<32x32xbf16>, vector<256x32xf32> -> vector<256x32xf32>
    %65 = vector.shape_cast %64 : vector<256x32xf32> to vector<16x16x32xf32>
    %66 = arith.addf %61, %65 : vector<16x16x32xf32>
    %67 = vector.extract_strided_slice %1 {offsets = [2, 2, 0, 0], sizes = [1, 1, 32, 32], strides = [1, 1, 1, 1]} : vector<3x3x32x32xbf16> to vector<1x1x32x32xbf16>
    %68 = vector.shape_cast %67 : vector<1x1x32x32xbf16> to vector<32x32xbf16>
    %cst_28 = arith.constant dense<0.000000e+00> : vector<256x32xf32>
    %69 = tpu.matmul %14, %68, %cst_28 {dimension_numbers = #tpu.dot_dimension_numbers<[1], [0], [0], [1], [0, 0, 1, 1], [], []>} : vector<256x32xbf16>, vector<32x32xbf16>, vector<256x32xf32> -> vector<256x32xf32>
    %70 = vector.shape_cast %69 : vector<256x32xf32> to vector<16x16x32xf32>
    %71 = vector.extract_strided_slice %70 {offsets = [1, 0, 0], sizes = [15, 16, 32], strides = [1, 1, 1]} : vector<16x16x32xf32> to vector<15x16x32xf32>
    %72 = tpu.concatenate %71, %15 in 0 : vector<15x16x32xf32>, vector<1x16x32xf32> -> vector<16x16x32xf32>
    %73 = arith.addf %66, %72 : vector<16x16x32xf32>
    %74 = vector.extract_strided_slice %73 {offsets = [0, 1, 0], sizes = [16, 15, 32], strides = [1, 1, 1]} : vector<16x16x32xf32> to vector<16x15x32xf32>
    %75 = tpu.concatenate %74, %16 in 1 : vector<16x15x32xf32>, vector<16x1x32xf32> -> vector<16x16x32xf32>
    %76 = arith.addf %55, %75 : vector<16x16x32xf32>
    %77 = vector.shape_cast %76 : vector<16x16x32xf32> to vector<256x32xf32>
    %78 = vector.broadcast %4 : vector<1x32xf32> to vector<256x32xf32>
    %79 = arith.addf %77, %78 : vector<256x32xf32>
    %cst_29 = arith.constant 0.000000e+00 : f32
    %80 = vector.broadcast %cst_29 : f32 to vector<256x32xf32>
    %81 = arith.maximumf %79, %80 : vector<256x32xf32>
    %82 = arith.truncf %81 : vector<256x32xf32> to vector<256x32xbf16>
    %cst_30 = arith.constant dense<0.000000e+00> : vector<256x128xf32>
    %83 = tpu.matmul %82, %2, %cst_30 {dimension_numbers = #tpu.dot_dimension_numbers<[1], [0], [0], [1], [0, 0, 1, 1], [], []>} : vector<256x32xbf16>, vector<32x128xbf16>, vector<256x128xf32> -> vector<256x128xf32>
    %84 = vector.broadcast %5 : vector<1x128xf32> to vector<256x128xf32>
    %85 = arith.addf %83, %84 : vector<256x128xf32>
    %c0_31 = arith.constant 0 : index
    %c0_32 = arith.constant 0 : index
    %c0_33 = arith.constant 0 : index
    %c0_34 = arith.constant 0 : index
    %86 = vector.load %arg1[%c0_31, %c0_32, %c0_33, %c0_34] : memref<1x16x16x128xf32, #tpu.memory_space<vmem>>, vector<1x16x16x128xf32>
    %87 = vector.shape_cast %86 : vector<1x16x16x128xf32> to vector<256x128xf32>
    %88 = arith.addf %85, %87 : vector<256x128xf32>
    %cst_35 = arith.constant 0.000000e+00 : f32
    %89 = vector.broadcast %cst_35 : f32 to vector<256x128xf32>
    %90 = arith.maximumf %88, %89 : vector<256x128xf32>
    %91 = vector.shape_cast %90 : vector<256x128xf32> to vector<1x16x16x128xf32>
    %c0_36 = arith.constant 0 : index
    %c0_37 = arith.constant 0 : index
    %c0_38 = arith.constant 0 : index
    %c0_39 = arith.constant 0 : index
    %92 = vector.load %arg8[%c0_36, %c0_37, %c0_38, %c0_39] : memref<1x16x16x128xf32, #tpu.memory_space<vmem>>, vector<1x16x16x128xf32>
    tpu.vector_store %arg8[%c0_36, %c0_37, %c0_38, %c0_39], %91 {strides = array<i32>} : memref<1x16x16x128xf32, #tpu.memory_space<vmem>>, vector<1x16x16x128xf32>,
    return
  }
  func.func @transform_0(%arg0: i32) -> (i32, i32, i32, i32) {
    %c0_i32 = arith.constant 0 : i32
    %c0_i32_0 = arith.constant 0 : i32
    %c0_i32_1 = arith.constant 0 : i32
    %c0_i32_2 = arith.constant 0 : i32
    return %arg0, %c0_i32, %c0_i32_0, %c0_i32_1 : i32, i32, i32, i32
  }
  func.func @transform_1(%arg0: i32) -> (i32, i32) {
    %c0_i32 = arith.constant 0 : i32
    %c0_i32_0 = arith.constant 0 : i32
    %c0_i32_1 = arith.constant 0 : i32
    return %c0_i32, %c0_i32_0 : i32, i32
  }
  func.func @transform_2(%arg0: i32) -> (i32, i32) {
    %c0_i32 = arith.constant 0 : i32
    %c0_i32_0 = arith.constant 0 : i32
    %c0_i32_1 = arith.constant 0 : i32
    return %c0_i32, %c0_i32_0 : i32, i32
  }
  func.func @transform_3(%arg0: i32) -> (i32, i32, i32, i32) {
    %c0_i32 = arith.constant 0 : i32
    %c0_i32_0 = arith.constant 0 : i32
    %c0_i32_1 = arith.constant 0 : i32
    %c0_i32_2 = arith.constant 0 : i32
    %c0_i32_3 = arith.constant 0 : i32
    return %c0_i32, %c0_i32_0, %c0_i32_1, %c0_i32_2 : i32, i32, i32, i32
  }
  func.func @transform_4(%arg0: i32) -> (i32, i32) {
    %c0_i32 = arith.constant 0 : i32
    %c0_i32_0 = arith.constant 0 : i32
    %c0_i32_1 = arith.constant 0 : i32
    return %c0_i32, %c0_i32_0 : i32, i32
  }
  func.func @transform_5(%arg0: i32) -> (i32, i32) {
    %c0_i32 = arith.constant 0 : i32
    %c0_i32_0 = arith.constant 0 : i32
    %c0_i32_1 = arith.constant 0 : i32
    return %c0_i32, %c0_i32_0 : i32, i32
  }
  func.func @transform_6(%arg0: i32) -> (i32, i32) {
    %c0_i32 = arith.constant 0 : i32
    %c0_i32_0 = arith.constant 0 : i32
    %c0_i32_1 = arith.constant 0 : i32
    return %c0_i32, %c0_i32_0 : i32, i32
  }
  func.func @transform_7(%arg0: i32) -> (i32, i32, i32, i32) {
    %c0_i32 = arith.constant 0 : i32
    %c0_i32_0 = arith.constant 0 : i32
    %c0_i32_1 = arith.constant 0 : i32
    %c0_i32_2 = arith.constant 0 : i32
    return %arg0, %c0_i32, %c0_i32_0, %c0_i32_1 : i32, i32, i32, i32
  }
}

</mosaic_0001>

<bundles_post_ra>
// kernel: bottleneck_block_nhwc.1
= control target key start
LH: loop header
LB: loop body
LE: loop exit
PB: predicated region body
PF: predicated region fallthrough
CT: control target
= control target key end

     0   :  { %12 = vsyncpa [#allocation3], 0  ;;  %s4118_s0 = inlined_call_operand.vmem [shape: f32[2,16,16,128], index: 0, kind: input, shape index: {}]   ;;  %s4119_s1 = inlined_call_operand.vmem [shape: bf16[128,32], index: 1, kind: input, shape index: {}]   ;;  %s4120_s2 = inlined_call_operand.vmem [shape: f32[1,32], index: 2, kind: input, shape index: {}]   ;;  %s4121_s3 = inlined_call_operand.vmem [shape: bf16[3,3,32,32], index: 3, kind: input, shape index: {}]   ;;  %s4122_s4 = inlined_call_operand.vmem [shape: f32[1,32], index: 4, kind: input, shape index: {}]   ;;  %s4123_s5 = inlined_call_operand.vmem [shape: bf16[32,128], index: 5, kind: input, shape index: {}]   ;;  %s4124_s6 = inlined_call_operand.vmem [shape: f32[1,128], index: 6, kind: input, shape index: {}]   ;;  %s4125_s7 = inlined_call_operand.hbm [shape: f32[2,16,16,128], index: 7, kind: output, shape index: {}]  }
   0x1   :  { %14 = vsyncpa [#allocation3 + $0x1], 0  ;;  %s2944_s24 = smov 0   ;;  %s2946_s25 = smov 0  }
   0x2   :  { %s2948_s26 = smov 0   ;;  %s2950_s27 = smov 0  }
   0x3 LB: > { %s2965_s28 = sadd.s32 4294967295, %s2900_s27   ;;  %s2442_s29 = sadd.s32 4294967294, %s2900_s27   ;;  %s2900_s27 = sphi %s2950_s27, %s4215_s27   ;;  %s2896_s26 = sphi %s2948_s26, %s4214_s26   ;;  %s2892_s25 = sphi %s2946_s25, %s4213_s25   ;;  %s2888_s24 = sphi %s2944_s24, %s4212_s24  }
   0x4   : > { %s2969_s30 = sadd.s32 1, %s2900_s27   ;;  %s179_s8 = sadd.s32 1, %s2896_s26 }
   0x5   : > { %s176_s9 = ssub.s32 %s2900_s27, %s2969_s30  ;;  %p189_p0 = scmp.ne.s32.totalorder %s2896_s26, %s2892_s25 }
   0x6   : > { %p177_p1 = scmp.eq.s32.totalorder %s176_s9, 0  ;;  %p190_p2 = scmp.eq.s32.totalorder %s2965_s28, 1 }
   0x7   : > { %p195_p3 = scmp.ne.s32.totalorder %s2892_s25, %s2888_s24  ;;  %p196_p4 = scmp.eq.s32.totalorder %s2442_s29, 1 }
   0x8   : > { %s2980_s10 = scalar_select %p177_p1, %s2896_s26, %s179_s8  }
   0x9   : > { %p2982_p5 = por %p190_p2, %p189_p0  ;;  %p2986_p6 = por %p196_p4, %p195_p3 }
   0xa   : > { %p2445_p7 = scmp.ge.s32.totalorder %s2900_s27, 1  ;;  %p240_p8 = scmp.lt.s32.totalorder %s2900_s27, 3 }
   0xc   : > { %p241_p9 = pnand %p2445_p7, %p240_p8 }
   0xe   : > { %244 = sbr.rel (%p241_p9) target bundleno = 1262 (0x4ee), region = 48 }
  0x13   : > { %v2734_v0 = vld [vmem:[%s4119_s1 + $0x38] sm:$0xff]  ;;  %v2733_v1 = vld [vmem:[%s4119_s1 + $0x30] sm:$0xff]  ;;  %v2732_v2 = vld [vmem:[%s4119_s1 + $0x28] sm:$0xff]  ;;  %p272_p10 = scmp.lt.s32.totalorder %s2965_s28, 1  ;;  %vm585_vm0 = vcmask 261120   ;;  %vm1017_vm1 = vcmask 1040384  }
  0x14   : > { %436 = vmatpush.bf16.msra.mxu0 %v2734_v0  ;;  %v2731_v3 = vld [vmem:[%s4119_s1 + $0x20] sm:$0xff]  ;;  %v2730_v4 = vld [vmem:[%s4119_s1 + $0x18] sm:$0xff]  ;;  %v2729_v5 = vld [vmem:[%s4119_s1 + $0x10] sm:$0xff]  ;;  %vm1904_vm2 = vcmask 1046528   ;;  %s269_s13 = sand.u32 1, %s2892_s25   ;;  %s2755_s16 = sshll.u32 %s2965_s28, 8 }
  0x15   : > { %s273_s23 = scalar_select %p272_p10, %s2965_s28, 1  ;;  %v2728_v6 = vld [vmem:[%s4119_s1 + $0x8] sm:$0xff]  ;;  %v2727_v7 = vld [vmem:[%s4119_s1] sm:$0xff]  ;;  %v2742_v48 = vld [vmem:[%s4121_s3 + $0x38] sm:$0xff] }
  0x16   : > { %v3044_v36 = vld [vmem:[%s4120_s2] ss:$0 sm:$0xff]  ;;  %v2736_v47 = vld [vmem:[%s4121_s3 + $0x8] sm:$0xff]  ;;  %2758 = vmatpush.bf16.msra.mxu2 %v2742_v48  ;;  %v2741_v54 = vld [vmem:[%s4121_s3 + $0x30] sm:$0xff]  ;;  %s2446_s14 = sshll.u32 %s269_s13, 8  ;;  %s2376_s20 = scalar_lea.hbm %s4125_s7, %s2755_s16 }
  0x17   : > { %s2726_s9 = sshll.u32 %s273_s23, 8  ;;  %v3061_v49 = vld [vmem:[%s4121_s3 + $0x68] sm:$0xff]  ;;  %2756 = vmatpush.bf16.msra.mxu1 %v2736_v47  ;;  %v2735_v53 = vld [vmem:[%s4121_s3] sm:$0xff]  ;;  %s3933_s15 = scalar_lea.vmem [#allocation2], %s2446_s14 }
  0x18   : > { %437 = vmatpush.bf16.msra.mxu0 %v2733_v1  ;;  %s3018_s17 = scalar_lea.vmem %s4118_s0, %s2726_s9  ;;  %2760 = vmatpush.bf16.msra.mxu3 %v3061_v49  ;;  %v3075_v55 = vld [vmem:[%s4121_s3 + $0x60] sm:$0xff]  ;;  %v2744_v63 = vld [vmem:[%s4121_s3 + $0x48] sm:$0xff]  ;;  %s2377_s21 = sshll.u32 %s3933_s15, 4  ;;  %s2378_s21 = int_to_ptr.vmem [resolvable:$true] %s2377_s21 }
  0x19   : > { %v337_v8 = vld [vmem:[%s3018_s17] sm:$0xff]  ;;  %v338_v9 = vld [vmem:[%s3018_s17 + $0x8] sm:$0xff]  ;;  %v339_v11 = vld [vmem:[%s3018_s17 + $0x10] sm:$0xff]  ;;  %s2379_s22 = sshll.u32 %s2376_s20, 4  ;;  %s2365_s28 = scalar_lea.sflag [#allocation3], %s269_s13  ;;  %s2380_s22 = int_to_ptr.hbm [resolvable:$true] %s2379_s22 }
  0x1a   : > { %v369_v10 = vpack.c.bf16 %v338_v9, %v337_v8  ;;  %v340_v12 = vld [vmem:[%s3018_s17 + $0x18] sm:$0xff]  ;;  %v341_v14 = vld [vmem:[%s3018_s17 + $0x20] sm:$0xff]  ;;  %v342_v15 = vld [vmem:[%s3018_s17 + $0x28] sm:$0xff]  ;;  %2759 = vmatpush.bf16.msra.mxu2 %v2741_v54  ;;  %s2852_s23 = sshra.s32 %s2380_s22, 4  ;;  %s2858_s14 = scalar_lea.hbm %s4125_s7, 512  ;;  %s2853_s23 = int_to_ptr.hbm [resolvable:$true] %s2852_s23 }
  0x1b   : > { %v370_v13 = vpack.c.bf16 %v340_v12, %v339_v11  ;;  %v371_v16 = vpack.c.bf16 %v342_v15, %v341_v14  ;;  %v343_v17 = vld [vmem:[%s3018_s17 + $0x30] sm:$0xff]  ;;  %v344_v18 = vld [vmem:[%s3018_s17 + $0x38] sm:$0xff]  ;;  %v345_v20 = vld [vmem:[%s3018_s17 + $0x40] sm:$0xff]  ;;  %2757 = vmatpush.bf16.msra.mxu1 %v2735_v53  ;;  %s2854_s29 = scalar_lea.hbm %s2853_s23, 256  ;;  %p2859_p0 = scmp.lt.s32.totalorder %s2853_s23, %s4125_s7 }
  0x1c   : > { %438 = vmatpush.bf16.msra.mxu0 %v2732_v2  ;;  %v372_v19 = vpack.c.bf16 %v344_v18, %v343_v17  ;;  %v346_v21 = vld [vmem:[%s3018_s17 + $0x48] sm:$0xff]  ;;  %v347_v23 = vld [vmem:[%s3018_s17 + $0x50] sm:$0xff]  ;;  %v348_v24 = vld [vmem:[%s3018_s17 + $0x58] sm:$0xff]  ;;  %2761 = vmatpush.bf16.msra.mxu3 %v3075_v55  ;;  %p2855_p11 = scmp.ne.s32.totalorder %s2853_s23, %s2854_s29  ;;  %p2860_p1 = scmp.lt.s32.totalorder %s2858_s14, %s2854_s29 }
  0x1d   : > { %v373_v22 = vpack.c.bf16 %v346_v21, %v345_v20  ;;  %v374_v25 = vpack.c.bf16 %v348_v24, %v347_v23  ;;  %v349_v26 = vld [vmem:[%s3018_s17 + $0x60] sm:$0xff]  ;;  %v350_v27 = vld [vmem:[%s3018_s17 + $0x68] sm:$0xff]  ;;  %v351_v29 = vld [vmem:[%s3018_s17 + $0x70] sm:$0xff] }
  0x1e   : > { %v375_v28 = vpack.c.bf16 %v350_v27, %v349_v26  ;;  %v352_v30 = vld [vmem:[%s3018_s17 + $0x78] sm:$0xff]  ;;  %v353_v32 = vld [vmem:[%s3018_s17 + $0x80] sm:$0xff]  ;;  %v354_v33 = vld [vmem:[%s3018_s17 + $0x88] sm:$0xff]  ;;  %1231 = vmatpush.bf16.msrb.mxu2 %v2744_v63  ;;  %p2856_p12 = pnand %p2855_p11, %p2982_p5  ;;  %p2861_p2 = por %p2860_p1, %p2859_p0 }
  0x1f   : > { %v376_v31 = vpack.c.bf16 %v352_v30, %v351_v29  ;;  %v377_v34 = vpack.c.bf16 %v354_v33, %v353_v32  ;;  %v355_v42 = vld [vmem:[%s3018_s17 + $0x90] sm:$0xff]  ;;  %v356_v43 = vld [vmem:[%s3018_s17 + $0x98] sm:$0xff]  ;;  %v357_v58 = vld [vmem:[%s3018_s17 + $0xa0] sm:$0xff] }
  0x20   : > { %439 = vmatpush.bf16.msra.mxu0 %v2731_v3  ;;  %v378_v45 = vpack.c.bf16 %v356_v43, %v355_v42  ;;  %v358_v59 = vld [vmem:[%s3018_s17 + $0xa8] sm:$0xff]  ;;  %v363_v26 = vld [vmem:[%s3018_s17 + $0xd0] sm:$0xff]  ;;  %v364_v27 = vld [vmem:[%s3018_s17 + $0xd8] sm:$0xff]  ;;  %p2857_p13 = pneg %p2856_p12 }
  0x21   : > { %v379_v61 = vpack.c.bf16 %v358_v59, %v357_v58  ;;  %v362_v17 = vld [vmem:[%s3018_s17 + $0xc8] sm:$0xff]  ;;  %v382_v29 = vpack.c.bf16 %v364_v27, %v363_v26  ;;  %v2743_v63 = vld [vmem:[%s4121_s3 + $0x40] sm:$0xff] }
  0x22   : > { %1232 = vmatpush.bf16.msrb.mxu2 %v2743_v63  ;;  %p2862_p3 = pnand %p2861_p2, %p2857_p13 }
  0x24   : > { %440 = vmatpush.bf16.msra.mxu0 %v2730_v4 }
  0x28   : > { %441 = vmatpush.bf16.msra.mxu0 %v2729_v5  ;;  %v359_v5 = vld [vmem:[%s3018_s17 + $0xb0] sm:$0xff] }
  0x2c   : > { %442 = vmatpush.bf16.msra.mxu0 %v2728_v6  ;;  %v360_v6 = vld [vmem:[%s3018_s17 + $0xb8] sm:$0xff] }
  0x2d   : > { %v380_v8 = vpack.c.bf16 %v360_v6, %v359_v5 }
  0x30   : > { %443 = vmatpush.bf16.msra.mxu0 %v2727_v7 }
  0x33   : > { %444 = vmatmul.bf16.vlgmr.msra.gmra.mxu0 %v369_v10  ;;  %v2738_v10 = vld [vmem:[%s4121_s3 + $0x18] sm:$0xff] }
  0x34   : > { %640 = vmatpush.bf16.msrb.mxu0 %v2736_v47  ;;  %1132 = vmatpush.bf16.msrb.mxu1 %v2738_v10 }
  0x38   : > { %641 = vmatpush.bf16.msrb.mxu0 %v2735_v53 }
  0x3c   : > { %739 = vmatpush.bf16.msra.mxu0 %v2742_v48  ;;  %v367_v48 = vld [vmem:[%s3018_s17 + $0xf0] sm:$0xff] }
  0x40   : > { %740 = vmatpush.bf16.msra.mxu0 %v2741_v54 }
  0x43   : > { %449 = vmatmul.bf16.gmra.mxu0 %v370_v13 }
  0x53   : > { %454 = vmatmul.bf16.gmra.mxu0 %v371_v16  ;;  %v361_v16 = vld [vmem:[%s3018_s17 + $0xc0] sm:$0xff] }
  0x63   : > { %459 = vmatmul.bf16.gmra.mxu0 %v372_v19  ;;  %v381_v19 = vpack.c.bf16 %v362_v17, %v361_v16 }
  0x73   : > { %464 = vmatmul.bf16.gmra.mxu0 %v373_v22 }
  0x83   : > { %469 = vmatmul.bf16.gmra.mxu0 %v374_v25 }
  0x93   : > { %474 = vmatmul.bf16.gmra.mxu0 %v375_v28 }
  0xa3   : > { %479 = vmatmul.bf16.gmra.mxu0 %v376_v31 }
  0xb0   : > { %v445_v35 = vpop.f32.mrf.mxu0 }
  0xb1   : > { %v446_v37 = vadd.f32 %v3044_v36, %v445_v35 }
  0xb3   : > { %484 = vmatmul.bf16.gmra.mxu0 %v377_v34  ;;  %v525_v40 = vmax.f32 %v446_v37, 0.0  ;;  %v365_v37 = vld [vmem:[%s3018_s17 + $0xe0] sm:$0xff] }
  0xb8   : > { %v447_v38 = vpop.f32.mrf.mxu0 }
  0xb9   : > { %v448_v39 = vadd.f32 %v3044_v36, %v447_v38  ;;  %v366_v38 = vld [vmem:[%s3018_s17 + $0xe8] sm:$0xff] }
  0xbb   : > { %v526_v41 = vmax.f32 %v448_v39, 0.0 }
  0xbd   : > { %v3050_v44 = vpack.c.bf16 %v526_v41, %v525_v40  ;;  %v383_v40 = vpack.c.bf16 %v366_v38, %v365_v37 }
  0xc0   : > { %v450_v46 = vpop.f32.mrf.mxu0 }
  0xc1   : > { %v451_v50 = vadd.f32 %v3044_v36, %v450_v46 }
  0xc3   : > { %489 = vmatmul.bf16.gmra.mxu0 %v378_v45  ;;  %v527_v56 = vmax.f32 %v451_v50, 0.0  ;;  %v368_v50 = vld [vmem:[%s3018_s17 + $0xf8] sm:$0xff] }
  0xc8   : > { %v452_v51 = vpop.f32.mrf.mxu0 }
  0xc9   : > { %v453_v52 = vadd.f32 %v3044_v36, %v452_v51 }
  0xcb   : > { %v528_v57 = vmax.f32 %v453_v52, 0.0  ;;  %v384_v52 = vpack.c.bf16 %v368_v50, %v367_v48 }
  0xcd   : > { %v3079_v60 = vpack.c.bf16 %v528_v57, %v527_v56 }
  0xd0   : > { %v455_v62 = vpop.f32.mrf.mxu0 }
  0xd1   : > { %v456_v0 = vadd.f32 %v3044_v36, %v455_v62 }
  0xd3   : > { %494 = vmatmul.bf16.gmra.mxu0 %v379_v61  ;;  %v529_v3 = vmax.f32 %v456_v0, 0.0 }
  0xd8   : > { %v457_v1 = vpop.f32.mrf.mxu0 }
  0xd9   : > { %v458_v2 = vadd.f32 %v3044_v36, %v457_v1 }
  0xdb   : > { %v530_v4 = vmax.f32 %v458_v2, 0.0 }
  0xdd   : > { %v3089_v7 = vpack.c.bf16 %v530_v4, %v529_v3 }
  0xe0   : > { %v460_v9 = vpop.f32.mrf.mxu0 }
  0xe1   : > { %v461_v11 = vadd.f32 %v3044_v36, %v460_v9 }
  0xe3   : > { %499 = vmatmul.bf16.gmra.mxu0 %v380_v8  ;;  %v531_v14 = vmax.f32 %v461_v11, 0.0 }
  0xe8   : > { %v462_v12 = vpop.f32.mrf.mxu0 }
  0xe9   : > { %v463_v13 = vadd.f32 %v3044_v36, %v462_v12  ;;  %v2737_v12 = vld [vmem:[%s4121_s3 + $0x10] sm:$0xff] }
  0xea   : > { %1133 = vmatpush.bf16.msrb.mxu1 %v2737_v12 }
  0xeb   : > { %v532_v15 = vmax.f32 %v463_v13, 0.0 }
  0xed   : > { %v3098_v18 = vpack.c.bf16 %v532_v15, %v531_v14 }
  0xef   : > { %2492 = vmatmul.msk.bf16.vlgmr.msra.gmra.mxu1 %vm585_vm0, %v3098_v18  ;;  %2516 = vmatmul.msk.bf16.vlgmr.msra.gmra.mxu2 %vm585_vm0, %v3098_v18 }
  0xf0   : > { %2540 = vmatmul.msk.bf16.vlgmr.msra.gmra.mxu3 %vm585_vm0, %v3098_v18  ;;  %v465_v20 = vpop.f32.mrf.mxu0 }
  0xf1   : > { %v466_v21 = vadd.f32 %v3044_v36, %v465_v20 }
  0xf3   : > { %504 = vmatmul.bf16.gmra.mxu0 %v381_v19  ;;  %v533_v24 = vmax.f32 %v466_v21, 0.0 }
  0xf8   : > { %v467_v22 = vpop.f32.mrf.mxu0 }
  0xf9   : > { %v468_v23 = vadd.f32 %v3044_v36, %v467_v22 }
  0xfb   : > { %v534_v25 = vmax.f32 %v468_v23, 0.0 }
  0xfd   : > { %v3110_v28 = vpack.c.bf16 %v534_v25, %v533_v24 }
  0xff   : > { %2493 = vmatmul.msk.bf16.gmra.mxu1 %vm585_vm0, %v3110_v28  ;;  %2517 = vmatmul.msk.bf16.gmra.mxu2 %vm585_vm0, %v3110_v28 }
 0x100   : > { %2541 = vmatmul.msk.bf16.gmra.mxu3 %vm585_vm0, %v3110_v28  ;;  %v470_v30 = vpop.f32.mrf.mxu0 }
 0x101   : > { %v471_v31 = vadd.f32 %v3044_v36, %v470_v30 }
 0x103   : > { %509 = vmatmul.bf16.gmra.mxu0 %v382_v29  ;;  %v535_v34 = vmax.f32 %v471_v31, 0.0 }
 0x108   : > { %v472_v32 = vpop.f32.mrf.mxu0 }
 0x109   : > { %v473_v33 = vadd.f32 %v3044_v36, %v472_v32 }
 0x10b   : > { %v536_v35 = vmax.f32 %v473_v33, 0.0 }
 0x10d   : > { %v3122_v39 = vpack.c.bf16 %v536_v35, %v535_v34 }
 0x10f   : > { %2494 = vmatmul.msk.bf16.gmra.mxu1 %vm585_vm0, %v3122_v39  ;;  %2518 = vmatmul.msk.bf16.gmra.mxu2 %vm585_vm0, %v3122_v39 }
 0x110   : > { %2542 = vmatmul.msk.bf16.gmra.mxu3 %vm585_vm0, %v3122_v39  ;;  %v475_v41 = vpop.f32.mrf.mxu0 }
 0x111   : > { %v476_v42 = vadd.f32 %v3044_v36, %v475_v41 }
 0x113   : > { %514 = vmatmul.bf16.gmra.mxu0 %v383_v40  ;;  %v537_v46 = vmax.f32 %v476_v42, 0.0 }
 0x118   : > { %v477_v43 = vpop.f32.mrf.mxu0 }
 0x119   : > { %v478_v45 = vadd.f32 %v3044_v36, %v477_v43 }
 0x11b   : > { %v538_v47 = vmax.f32 %v478_v45, 0.0 }
 0x11d   : > { %v3134_v51 = vpack.c.bf16 %v538_v47, %v537_v46  ;;  %v2750_v46 = vld [vmem:[%s4121_s3 + $0x78] sm:$0xff] }
 0x11e   : > { %1364 = vmatpush.bf16.msrb.mxu3 %v2750_v46 }
 0x11f   : > { %2495 = vmatmul.msk.bf16.gmra.mxu1 %vm585_vm0, %v3134_v51  ;;  %2519 = vmatmul.msk.bf16.gmra.mxu2 %vm585_vm0, %v3134_v51 }
 0x120   : > { %2543 = vmatmul.msk.bf16.gmra.mxu3 %vm585_vm0, %v3134_v51  ;;  %v480_v53 = vpop.f32.mrf.mxu0 }
 0x121   : > { %v481_v54 = vadd.f32 %v3044_v36, %v480_v53 }
 0x123   : > { %519 = vmatmul.bf16.gmra.mxu0 %v384_v52  ;;  %v539_v58 = vmax.f32 %v481_v54, 0.0 }
 0x128   : > { %v482_v56 = vpop.f32.mrf.mxu0 }
 0x129   : > { %v483_v57 = vadd.f32 %v3044_v36, %v482_v56 }
 0x12b   : > { %v540_v59 = vmax.f32 %v483_v57, 0.0 }
 0x12d   : > { %v3144_v61 = vpack.c.bf16 %v540_v59, %v539_v58 }
 0x12f   : > { %2496 = vmatmul.msk.bf16.gmra.mxu1 %vm585_vm0, %v3144_v61  ;;  %2520 = vmatmul.msk.bf16.gmra.mxu2 %vm585_vm0, %v3144_v61 }
 0x130   : > { %2544 = vmatmul.msk.bf16.gmra.mxu3 %vm585_vm0, %v3144_v61  ;;  %v485_v62 = vpop.f32.mrf.mxu0 }
 0x131   : > { %v486_v0 = vadd.f32 %v3044_v36, %v485_v62 }
 0x133   : > { %2489 = vmatmul.msk.bf16.vlgmr.msrb.gmra.mxu0 %vm585_vm0, %v3050_v44  ;;  %v541_v3 = vmax.f32 %v486_v0, 0.0 }
 0x134   : > { %872 = vmatpush.bf16.msrb.mxu0 %v3061_v49 }
 0x138   : > { %v487_v1 = vpop.f32.mrf.mxu0  ;;  %873 = vmatpush.bf16.msrb.mxu0 %v3075_v55 }
 0x139   : > { %v488_v2 = vadd.f32 %v3044_v36, %v487_v1 }
 0x13b   : > { %v542_v4 = vmax.f32 %v488_v2, 0.0 }
 0x13d   : > { %v3161_v5 = vpack.c.bf16 %v542_v4, %v541_v3 }
 0x13f   : > { %4144 = vst [vmem:[#allocation5_spill] sm:$0xff] %v3161_v5  ;;  %2497 = vmatmul.msk.bf16.gmra.mxu1 %vm585_vm0, %v3161_v5  ;;  %2521 = vmatmul.msk.bf16.gmra.mxu2 %vm585_vm0, %v3161_v5 }
 0x140   : > { %2545 = vmatmul.msk.bf16.gmra.mxu3 %vm585_vm0, %v3161_v5  ;;  %v490_v49 = vpop.f32.mrf.mxu0 }
 0x141   : > { %v491_v55 = vadd.f32 %v3044_v36, %v490_v49 }
 0x143   : > { %2490 = vmatmul.msk.bf16.gmra.mxu0 %vm585_vm0, %v3079_v60  ;;  %v543_v9 = vmax.f32 %v491_v55, 0.0 }
 0x148   : > { %v492_v6 = vpop.f32.mrf.mxu0 }
 0x149   : > { %v493_v8 = vadd.f32 %v3044_v36, %v492_v6 }
 0x14b   : > { %v544_v10 = vmax.f32 %v493_v8, 0.0 }
 0x14d   : > { %v3173_v11 = vpack.c.bf16 %v544_v10, %v543_v9 }
 0x14f   : > { %2498 = vmatmul.msk.bf16.gmra.mxu1 %vm585_vm0, %v3173_v11  ;;  %2522 = vmatmul.msk.bf16.gmra.mxu2 %vm585_vm0, %v3173_v11 }
 0x150   : > { %2546 = vmatmul.msk.bf16.gmra.mxu3 %vm585_vm0, %v3173_v11  ;;  %v495_v13 = vpop.f32.mrf.mxu0 }
 0x151   : > { %v496_v14 = vadd.f32 %v3044_v36, %v495_v13 }
 0x153   : > { %2491 = vmatmul.msk.bf16.gmra.mxu0 %vm585_vm0, %v3089_v7  ;;  %v545_v17 = vmax.f32 %v496_v14, 0.0 }
 0x158   : > { %v497_v15 = vpop.f32.mrf.mxu0 }
 0x159   : > { %v498_v16 = vadd.f32 %v3044_v36, %v497_v15 }
 0x15b   : > { %v546_v19 = vmax.f32 %v498_v16, 0.0 }
 0x15d   : > { %v3188_v20 = vpack.c.bf16 %v546_v19, %v545_v17  ;;  %v2749_v19 = vld [vmem:[%s4121_s3 + $0x70] sm:$0xff] }
 0x15e   : > { %1365 = vmatpush.bf16.msrb.mxu3 %v2749_v19 }
 0x15f   : > { %2499 = vmatmul.msk.bf16.gmra.mxu1 %vm585_vm0, %v3188_v20  ;;  %2523 = vmatmul.msk.bf16.gmra.mxu2 %vm585_vm0, %v3188_v20 }
 0x160   : > { %2547 = vmatmul.msk.bf16.gmra.mxu3 %vm585_vm0, %v3188_v20  ;;  %v500_v21 = vpop.f32.mrf.mxu0 }
 0x161   : > { %v501_v22 = vadd.f32 %v3044_v36, %v500_v21  ;;  %v2740_v21 = vld [vmem:[%s4121_s3 + $0x28] sm:$0xff] }
 0x163   : > { %2513 = vmatmul.msk.bf16.vlgmr.msra.gmra.mxu0 %vm585_vm0, %v3050_v44  ;;  %v547_v25 = vmax.f32 %v501_v22, 0.0 }
 0x164   : > { %1527 = vmatpush.bf16.msra.mxu0 %v2740_v21 }
 0x168   : > { %v502_v23 = vpop.f32.mrf.mxu0 }
 0x169   : > { %v503_v24 = vadd.f32 %v3044_v36, %v502_v23 }
 0x16b   : > { %v548_v26 = vmax.f32 %v503_v24, 0.0 }
 0x16c   : > { %v658_v27 = vpop.f32.mrf.mxu1 }
 0x16d   : > { %v3200_v29 = vpack.c.bf16 %v548_v26, %v547_v25 }
 0x16f   : > { %2500 = vmatmul.msk.bf16.gmra.mxu1 %vm585_vm0, %v3200_v29  ;;  %2524 = vmatmul.msk.bf16.gmra.mxu2 %vm585_vm0, %v3200_v29 }
 0x170   : > { %2548 = vmatmul.msk.bf16.gmra.mxu3 %vm585_vm0, %v3200_v29  ;;  %v505_v30 = vpop.f32.mrf.mxu0 }
 0x171   : > { %v506_v34 = vadd.f32 %v3044_v36, %v505_v30 }
 0x172   : > { %v3208_v31 = vpop.f32.mrf.mxu2 }
 0x173   : > { %v3210_v32 = vpop.f32.mrf.mxu3  ;;  %2514 = vmatmul.msk.bf16.gmra.mxu0 %vm585_vm0, %v3079_v60  ;;  %v549_v40 = vmax.f32 %v506_v34, 0.0 }
 0x174   : > { %v660_v33 = vpop.f32.mrf.mxu1 }
 0x178   : > { %v507_v35 = vpop.f32.mrf.mxu0 }
 0x179   : > { %v508_v37 = vadd.f32 %v3044_v36, %v507_v35 }
 0x17a   : > { %v3216_v38 = vpop.f32.mrf.mxu2 }
 0x17b   : > { %v550_v41 = vmax.f32 %v508_v37, 0.0  ;;  %v3218_v42 = vpop.f32.mrf.mxu3 }
 0x17c   : > { %v663_v43 = vpop.f32.mrf.mxu1 }
 0x17d   : > { %v3220_v45 = vpack.c.bf16 %v550_v41, %v549_v40 }
 0x17f   : > { %2501 = vmatmul.msk.bf16.gmra.mxu1 %vm585_vm0, %v3220_v45  ;;  %2525 = vmatmul.msk.bf16.gmra.mxu2 %vm585_vm0, %v3220_v45 }
 0x180   : > { %2549 = vmatmul.msk.bf16.gmra.mxu3 %vm585_vm0, %v3220_v45  ;;  %v510_v47 = vpop.f32.mrf.mxu0 }
 0x181   : > { %v511_v54 = vadd.f32 %v3044_v36, %v510_v47 }
 0x182   : > { %v762_v48 = vpop.f32.mrf.mxu2 }
 0x183   : > { %v830_v50 = vadd.f32 %v762_v48, %v658_v27  ;;  %v3231_v52 = vpop.f32.mrf.mxu3  ;;  %2515 = vmatmul.msk.bf16.gmra.mxu0 %vm585_vm0, %v3089_v7  ;;  %v551_v59 = vmax.f32 %v511_v54, 0.0  ;;  %v2739_v27 = vld [vmem:[%s4121_s3 + $0x20] sm:$0xff] }
 0x184   : > { %v665_v53 = vpop.f32.mrf.mxu1  ;;  %1528 = vmatpush.bf16.msra.mxu0 %v2739_v27 }
 0x188   : > { %v512_v56 = vpop.f32.mrf.mxu0 }
 0x189   : > { %v513_v57 = vadd.f32 %v3044_v36, %v512_v56 }
 0x18a   : > { %v764_v58 = vpop.f32.mrf.mxu2 }
 0x18b   : > { %v552_v62 = vmax.f32 %v513_v57, 0.0  ;;  %v831_v63 = vadd.f32 %v764_v58, %v660_v33  ;;  %v3237_v0 = vpop.f32.mrf.mxu3  ;;  %v2752_v33 = vld [vmem:[%s4121_s3 + $0x88] sm:$0xff] }
 0x18c   : > { %v668_v1 = vpop.f32.mrf.mxu1  ;;  %1759 = vmatpush.bf16.msra.mxu2 %v2752_v33 }
 0x18d   : > { %v3239_v2 = vpack.c.bf16 %v552_v62, %v551_v59 }
 0x18f   : > { %2502 = vmatmul.msk.bf16.gmra.mxu1 %vm585_vm0, %v3239_v2  ;;  %2526 = vmatmul.msk.bf16.gmra.mxu2 %vm585_vm0, %v3239_v2 }
 0x190   : > { %2550 = vmatmul.msk.bf16.gmra.mxu3 %vm585_vm0, %v3239_v2  ;;  %v515_v3 = vpop.f32.mrf.mxu0 }
 0x191   : > { %v516_v9 = vadd.f32 %v3044_v36, %v515_v3 }
 0x192   : > { %v767_v4 = vpop.f32.mrf.mxu2 }
 0x193   : > { %v832_v49 = vadd.f32 %v767_v4, %v663_v43  ;;  %v898_v55 = vpop.f32.mrf.mxu3  ;;  %2537 = vmatmul.msk.bf16.vlgmr.msrb.gmra.mxu0 %vm585_vm0, %v3050_v44  ;;  %v553_v14 = vmax.f32 %v516_v9, 0.0 }
 0x194   : > { %v3249_v6 = vadd.f32 %v898_v55, %v830_v50  ;;  %v670_v8 = vpop.f32.mrf.mxu1 }
 0x196   : > { %v4134_v25 = vrot.slane %v3249_v6, 7 }
 0x198   : > { %v517_v10 = vpop.f32.mrf.mxu0 }
 0x199   : > { %v518_v12 = vadd.f32 %v3044_v36, %v517_v10 }
 0x19a   : > { %v769_v13 = vpop.f32.mrf.mxu2 }
 0x19b   : > { %v554_v15 = vmax.f32 %v518_v12, 0.0  ;;  %v833_v16 = vadd.f32 %v769_v13, %v665_v53  ;;  %v900_v17 = vpop.f32.mrf.mxu3  ;;  %v2746_v12 = vld [vmem:[%s4121_s3 + $0x58] sm:$0xff] }
 0x19c   : > { %v962_v22 = vadd.f32 %v900_v17, %v831_v63  ;;  %v673_v23 = vpop.f32.mrf.mxu1  ;;  %1626 = vmatpush.bf16.msra.mxu1 %v2746_v12 }
 0x19d   : > { %v3259_v24 = vpack.c.bf16 %v554_v15, %v553_v14 }
 0x19e   : > { %v1031_v26 = vrot.slane %v962_v22, 7 }
 0x19f   : > { %2503 = vmatmul.msk.bf16.gmra.mxu1 %vm585_vm0, %v3259_v24  ;;  %2527 = vmatmul.msk.bf16.gmra.mxu2 %vm585_vm0, %v3259_v24 }
 0x1a0   : > { %2551 = vmatmul.msk.bf16.gmra.mxu3 %vm585_vm0, %v3259_v24  ;;  %v520_v30 = vpop.f32.mrf.mxu0  ;;  %v3277_v34 = vsel %vm1017_vm1, %v4134_v25, %v1031_v26 }
 0x1a1   : > { %v521_v46 = vadd.f32 %v3044_v36, %v520_v30 }
 0x1a2   : > { %v772_v35 = vpop.f32.mrf.mxu2 }
 0x1a3   : > { %v834_v37 = vadd.f32 %v772_v35, %v668_v1  ;;  %v903_v40 = vpop.f32.mrf.mxu3  ;;  %2538 = vmatmul.msk.bf16.gmra.mxu0 %vm585_vm0, %v3079_v60  ;;  %v555_v53 = vmax.f32 %v521_v46, 0.0 }
 0x1a4   : > { %v3281_v41 = vadd.f32 %v903_v40, %v832_v49  ;;  %v675_v43 = vpop.f32.mrf.mxu1 }
 0x1a6   : > { %v4133_v63 = vrot.slane %v3281_v41, 7 }
 0x1a8   : > { %v522_v47 = vpop.f32.mrf.mxu0 }
 0x1a9   : > { %v523_v48 = vadd.f32 %v3044_v36, %v522_v47 }
 0x1aa   : > { %v774_v50 = vpop.f32.mrf.mxu2 }
 0x1ab   : > { %v556_v54 = vmax.f32 %v523_v48, 0.0  ;;  %v835_v56 = vadd.f32 %v774_v50, %v670_v8  ;;  %v905_v57 = vpop.f32.mrf.mxu3 }
 0x1ac   : > { %v964_v58 = vadd.f32 %v905_v57, %v833_v16  ;;  %v678_v59 = vpop.f32.mrf.mxu1 }
 0x1ad   : > { %v3285_v62 = vpack.c.bf16 %v556_v54, %v555_v53 }
 0x1ae   : > { %v1034_v1 = vrot.slane %v964_v58, 7 }
 0x1af   : > { %2504 = vmatmul.msk.bf16.gmra.mxu1 %vm585_vm0, %v3285_v62  ;;  %2528 = vmatmul.msk.bf16.gmra.mxu2 %vm585_vm0, %v3285_v62 }
 0x1b0   : > { %2552 = vmatmul.msk.bf16.gmra.mxu3 %vm585_vm0, %v3285_v62  ;;  %v3294_v36 = vpop.f32.mrf.mxu0  ;;  %v3299_v3 = vsel %vm1017_vm1, %v4133_v63, %v1034_v1 }
 0x1b2   : > { %v777_v4 = vpop.f32.mrf.mxu2 }
 0x1b3   : > { %v836_v49 = vadd.f32 %v777_v4, %v673_v23  ;;  %v908_v55 = vpop.f32.mrf.mxu3  ;;  %2539 = vmatmul.msk.bf16.gmra.mxu0 %vm585_vm0, %v3089_v7 }
 0x1b4   : > { %v3303_v8 = vadd.f32 %v908_v55, %v834_v37  ;;  %v680_v9 = vpop.f32.mrf.mxu1 }
 0x1b6   : > { %v4130_v19 = vrot.slane %v3303_v8, 7 }
 0x1b8   : > { %v3305_v10 = vpop.f32.mrf.mxu0 }
 0x1ba   : > { %v779_v13 = vpop.f32.mrf.mxu2 }
 0x1bb   : > { %v837_v14 = vadd.f32 %v779_v13, %v675_v43  ;;  %v910_v15 = vpop.f32.mrf.mxu3 }
 0x1bc   : > { %v966_v16 = vadd.f32 %v910_v15, %v835_v56  ;;  %v683_v17 = vpop.f32.mrf.mxu1 }
 0x1be   : > { %v1037_v21 = vrot.slane %v966_v16, 7 }
 0x1bf   : > { %2561 = vmatmul.msk.bf16.vlgmr.msrb.gmra.mxu1 %vm585_vm0, %v3050_v44  ;;  %2585 = vmatmul.msk.bf16.vlgmr.msrb.gmra.mxu2 %vm585_vm0, %v3050_v44 }
 0x1c0   : > { %2609 = vmatmul.msk.bf16.vlgmr.msrb.gmra.mxu3 %vm585_vm0, %v3050_v44  ;;  %v3317_v22 = vpop.f32.mrf.mxu0  ;;  %v3322_v23 = vsel %vm1017_vm1, %v4130_v19, %v1037_v21 }
 0x1c2   : > { %v782_v26 = vpop.f32.mrf.mxu2 }
 0x1c3   : > { %v838_v27 = vadd.f32 %v782_v26, %v678_v59  ;;  %v913_v30 = vpop.f32.mrf.mxu3  ;;  %2633 = vmatmul.msk.bf16.vlgmr.msra.gmra.mxu0 %vm585_vm0, %v3050_v44 }
 0x1c4   : > { %v3326_v33 = vadd.f32 %v913_v30, %v836_v49  ;;  %v685_v35 = vpop.f32.mrf.mxu1 }
 0x1c6   : > { %v4129_v50 = vrot.slane %v3326_v33, 7 }
 0x1c8   : > { %v3328_v37 = vpop.f32.mrf.mxu0 }
 0x1ca   : > { %v784_v40 = vpop.f32.mrf.mxu2 }
 0x1cb   : > { %v839_v43 = vadd.f32 %v784_v40, %v680_v9  ;;  %v915_v46 = vpop.f32.mrf.mxu3 }
 0x1cc   : > { %v968_v47 = vadd.f32 %v915_v46, %v837_v14  ;;  %v688_v48 = vpop.f32.mrf.mxu1 }
 0x1ce   : > { %v1040_v53 = vrot.slane %v968_v47, 7 }
 0x1cf   : > { %2562 = vmatmul.msk.bf16.gmra.mxu1 %vm585_vm0, %v3079_v60  ;;  %2586 = vmatmul.msk.bf16.gmra.mxu2 %vm585_vm0, %v3079_v60 }
 0x1d0   : > { %2610 = vmatmul.msk.bf16.gmra.mxu3 %vm585_vm0, %v3079_v60  ;;  %v653_v54 = vpop.f32.mrf.mxu0  ;;  %v3340_v56 = vsel %vm1017_vm1, %v4129_v50, %v1040_v53 }
 0x1d1   : > { %v828_v49 = vadd.f32 %v3208_v31, %v653_v54 }
 0x1d2   : > { %v787_v57 = vpop.f32.mrf.mxu2 }
 0x1d3   : > { %v840_v58 = vadd.f32 %v787_v57, %v683_v17  ;;  %v918_v59 = vpop.f32.mrf.mxu3  ;;  %2634 = vmatmul.msk.bf16.gmra.mxu0 %vm585_vm0, %v3079_v60  ;;  %v3348_v9 = vadd.f32 %v3231_v52, %v828_v49 }
 0x1d4   : > { %v3344_v1 = vadd.f32 %v918_v59, %v838_v27  ;;  %v690_v4 = vpop.f32.mrf.mxu1 }
 0x1d5   : > { %v4136_v26 = vrot.slane %v3348_v9, 7 }
 0x1d6   : > { %v4128_v30 = vrot.slane %v3344_v1, 7 }
 0x1d8   : > { %v655_v55 = vpop.f32.mrf.mxu0 }
 0x1d9   : > { %v829_v12 = vadd.f32 %v3216_v38, %v655_v55 }
 0x1da   : > { %v789_v13 = vpop.f32.mrf.mxu2 }
 0x1db   : > { %v960_v14 = vadd.f32 %v3237_v0, %v829_v12  ;;  %v841_v15 = vadd.f32 %v789_v13, %v685_v35  ;;  %v920_v16 = vpop.f32.mrf.mxu3 }
 0x1dc   : > { %v970_v17 = vadd.f32 %v920_v16, %v839_v43  ;;  %v693_v21 = vpop.f32.mrf.mxu1 }
 0x1dd   : > { %v1028_v27 = vrot.slane %v960_v14, 7 }
 0x1de   : > { %v1043_v40 = vrot.slane %v970_v17, 7 }
 0x1df   : > { %2563 = vmatmul.msk.bf16.gmra.mxu1 %vm585_vm0, %v3089_v7  ;;  %2587 = vmatmul.msk.bf16.gmra.mxu2 %vm585_vm0, %v3089_v7  ;;  %v3361_v31 = vsel %vm1017_vm1, %v4136_v26, %v1028_v27 }
 0x1e0   : > { %2611 = vmatmul.msk.bf16.gmra.mxu3 %vm585_vm0, %v3089_v7  ;;  %v3365_v38 = vpop.f32.mrf.mxu0  ;;  %v3370_v52 = vsel %vm1017_vm1, %v4128_v30, %v1043_v40 }
 0x1e2   : > { %v792_v0 = vpop.f32.mrf.mxu2 }
 0x1e3   : > { %v842_v35 = vadd.f32 %v792_v0, %v688_v48  ;;  %v923_v43 = vpop.f32.mrf.mxu3  ;;  %2635 = vmatmul.msk.bf16.gmra.mxu0 %vm585_vm0, %v3089_v7 }
 0x1e4   : > { %v3374_v46 = vadd.f32 %v923_v43, %v840_v58  ;;  %v695_v47 = vpop.f32.mrf.mxu1 }
 0x1e6   : > { %v4126_v12 = vrot.slane %v3374_v46, 7 }
 0x1e8   : > { %v3376_v53 = vpop.f32.mrf.mxu0 }
 0x1ea   : > { %v794_v54 = vpop.f32.mrf.mxu2 }
 0x1eb   : > { %v843_v57 = vadd.f32 %v794_v54, %v690_v4  ;;  %v925_v59 = vpop.f32.mrf.mxu3 }
 0x1ec   : > { %v972_v49 = vadd.f32 %v925_v59, %v841_v15  ;;  %v698_v55 = vpop.f32.mrf.mxu1 }
 0x1ee   : > { %v1046_v13 = vrot.slane %v972_v49, 7 }
 0x1ef   : > { %2564 = vmatmul.msk.bf16.gmra.mxu1 %vm585_vm0, %v3098_v18  ;;  %2588 = vmatmul.msk.bf16.gmra.mxu2 %vm585_vm0, %v3098_v18 }
 0x1f0   : > { %2612 = vmatmul.msk.bf16.gmra.mxu3 %vm585_vm0, %v3098_v18  ;;  %v747_v48 = vpop.f32.mrf.mxu0  ;;  %v3388_v58 = vsel %vm1017_vm1, %v4126_v12, %v1046_v13 }
 0x1f1   : > { %v3391_v4 = vadd.f32 %v747_v48, %v3294_v36 }
 0x1f2   : > { %v797_v14 = vpop.f32.mrf.mxu2 }
 0x1f3   : > { %v844_v15 = vadd.f32 %v797_v14, %v693_v21  ;;  %v928_v16 = vpop.f32.mrf.mxu3  ;;  %2636 = vmatmul.msk.bf16.gmra.mxu0 %vm585_vm0, %v3098_v18 }
 0x1f4   : > { %v3395_v17 = vadd.f32 %v928_v16, %v842_v35  ;;  %v700_v27 = vpop.f32.mrf.mxu1 }
 0x1f6   : > { %v4127_v36 = vrot.slane %v3395_v17, 7 }
 0x1f8   : > { %v749_v40 = vpop.f32.mrf.mxu0 }
 0x1f9   : > { %v3398_v0 = vadd.f32 %v749_v40, %v3305_v10 }
 0x1fa   : > { %v799_v43 = vpop.f32.mrf.mxu2 }
 0x1fb   : > { %v845_v54 = vadd.f32 %v799_v43, %v695_v47  ;;  %v930_v59 = vpop.f32.mrf.mxu3 }
 0x1fc   : > { %v974_v49 = vadd.f32 %v930_v59, %v843_v57  ;;  %v703_v13 = vpop.f32.mrf.mxu1 }
 0x1fe   : > { %v1049_v48 = vrot.slane %v974_v49, 7 }
 0x1ff   : > { %2565 = vmatmul.msk.bf16.gmra.mxu1 %vm585_vm0, %v3110_v28  ;;  %2589 = vmatmul.msk.bf16.gmra.mxu2 %vm585_vm0, %v3110_v28 }
 0x200   : > { %2613 = vmatmul.msk.bf16.gmra.mxu3 %vm585_vm0, %v3110_v28  ;;  %v752_v21 = vpop.f32.mrf.mxu0  ;;  %v3410_v10 = vsel %vm1017_vm1, %v4127_v36, %v1049_v48 }
 0x201   : > { %v826_v35 = vadd.f32 %v752_v21, %v3317_v22 }
 0x202   : > { %v802_v47 = vpop.f32.mrf.mxu2 }
 0x203   : > { %v846_v57 = vadd.f32 %v802_v47, %v698_v55  ;;  %v933_v14 = vpop.f32.mrf.mxu3  ;;  %2637 = vmatmul.msk.bf16.gmra.mxu0 %vm585_vm0, %v3110_v28  ;;  %v3418_v59 = vadd.f32 %v3210_v32, %v826_v35 }
 0x204   : > { %v3415_v16 = vadd.f32 %v933_v14, %v844_v15  ;;  %v705_v40 = vpop.f32.mrf.mxu1 }
 0x205   : > { %v4137_v47 = vrot.slane %v3418_v59, 7 }
 0x206   : > { %v4131_v15 = vrot.slane %v3415_v16, 7 }
 0x208   : > { %v754_v43 = vpop.f32.mrf.mxu0 }
 0x209   : > { %v827_v49 = vadd.f32 %v754_v43, %v3328_v37 }
 0x20a   : > { %v804_v12 = vpop.f32.mrf.mxu2 }
 0x20b   : > { %v958_v48 = vadd.f32 %v3218_v42, %v827_v49  ;;  %v847_v36 = vadd.f32 %v804_v12, %v700_v27  ;;  %v935_v22 = vpop.f32.mrf.mxu3 }
 0x20c   : > { %v976_v21 = vadd.f32 %v935_v22, %v845_v54  ;;  %v708_v55 = vpop.f32.mrf.mxu1 }
 0x20d   : > { %v1025_v30 = vrot.slane %v958_v48, 7 }
 0x20e   : > { %v1052_v14 = vrot.slane %v976_v21, 7 }
 0x20f   : > { %2566 = vmatmul.msk.bf16.gmra.mxu1 %vm585_vm0, %v3122_v39  ;;  %2590 = vmatmul.msk.bf16.gmra.mxu2 %vm585_vm0, %v3122_v39  ;;  %v3431_v32 = vsel %vm1017_vm1, %v4137_v47, %v1025_v30 }
 0x210   : > { %2614 = vmatmul.msk.bf16.gmra.mxu3 %vm585_vm0, %v3122_v39  ;;  %v875_v42 = vpop.f32.mrf.mxu0  ;;  %v3438_v37 = vsel %vm1017_vm1, %v4131_v15, %v1052_v14 }
 0x212   : > { %v807_v12 = vpop.f32.mrf.mxu2 }
 0x213   : > { %v848_v27 = vadd.f32 %v807_v12, %v703_v13  ;;  %v938_v54 = vpop.f32.mrf.mxu3  ;;  %2638 = vmatmul.msk.bf16.gmra.mxu0 %vm585_vm0, %v3122_v39 }
 0x214   : > { %v3442_v35 = vadd.f32 %v938_v54, %v846_v57  ;;  %v710_v43 = vpop.f32.mrf.mxu1  ;;  %v2751_v57 = vld [vmem:[%s4121_s3 + $0x80] sm:$0xff] }
 0x215   : > { %1760 = vmatpush.bf16.msra.mxu2 %v2751_v57 }
 0x216   : > { %v4132_v50 = vrot.slane %v3442_v35, 7 }
 0x218   : > { %v876_v30 = vpop.f32.mrf.mxu0 }
 0x21a   : > { %v809_v49 = vpop.f32.mrf.mxu2 }
 0x21b   : > { %v849_v48 = vadd.f32 %v809_v49, %v705_v40  ;;  %v940_v22 = vpop.f32.mrf.mxu3 }
 0x21c   : > { %v978_v21 = vadd.f32 %v940_v22, %v847_v36  ;;  %v713_v42 = vpop.f32.mrf.mxu1 }
 0x21e   : > { %v1055_v19 = vrot.slane %v978_v21, 7 }
 0x21f   : > { %2567 = vmatmul.msk.bf16.gmra.mxu1 %vm585_vm0, %v3134_v51  ;;  %2591 = vmatmul.msk.bf16.gmra.mxu2 %vm585_vm0, %v3134_v51 }
 0x220   : > { %2615 = vmatmul.msk.bf16.gmra.mxu3 %vm585_vm0, %v3134_v51  ;;  %v878_v13 = vpop.f32.mrf.mxu0  ;;  %v3457_v36 = vsel %vm1017_vm1, %v4132_v50, %v1055_v19 }
 0x221   : > { %v3460_v40 = vadd.f32 %v878_v13, %v3365_v38 }
 0x222   : > { %v812_v14 = vpop.f32.mrf.mxu2 }
 0x223   : > { %v850_v12 = vadd.f32 %v812_v14, %v708_v55  ;;  %v943_v54 = vpop.f32.mrf.mxu3  ;;  %2639 = vmatmul.msk.bf16.gmra.mxu0 %vm585_vm0, %v3134_v51  ;;  %v1018_v19 = vrot.slane %v3460_v40, 7 }
 0x224   : > { %v3464_v30 = vadd.f32 %v943_v54, %v848_v27  ;;  %v715_v49 = vpop.f32.mrf.mxu1 }
 0x226   : > { %v4135_v27 = vrot.slane %v3464_v30, 7 }
 0x228   : > { %v880_v22 = vpop.f32.mrf.mxu0 }
 0x229   : > { %v954_v21 = vadd.f32 %v880_v22, %v3376_v53  ;;  %v2745_v22 = vld [vmem:[%s4121_s3 + $0x50] sm:$0xff] }
 0x22a   : > { %v814_v15 = vpop.f32.mrf.mxu2  ;;  %1627 = vmatpush.bf16.msra.mxu1 %v2745_v22 }
 0x22b   : > { %v1019_v50 = vrot.slane %v954_v21, 7  ;;  %v851_v63 = vadd.f32 %v814_v15, %v710_v43  ;;  %v945_v38 = vpop.f32.mrf.mxu3 }
 0x22c   : > { %v980_v13 = vadd.f32 %v945_v38, %v849_v48  ;;  %v718_v25 = vpop.f32.mrf.mxu1 }
 0x22d   : > { %v3471_v55 = vsel %vm1017_vm1, %v1018_v19, %v1019_v50 }
 0x22e   : > { %v1058_v57 = vrot.slane %v980_v13, 7 }
 0x22f   : > { %2568 = vmatmul.msk.bf16.gmra.mxu1 %vm585_vm0, %v3144_v61  ;;  %2592 = vmatmul.msk.bf16.gmra.mxu2 %vm585_vm0, %v3144_v61 }
 0x230   : > { %2616 = vmatmul.msk.bf16.gmra.mxu3 %vm585_vm0, %v3144_v61  ;;  %v883_v53 = vpop.f32.mrf.mxu0  ;;  %v3483_v25 = vsel %vm1017_vm1, %v4135_v27, %v1058_v57 }
 0x231   : > { %v3486_v50 = vadd.f32 %v883_v53, %v3391_v4 }
 0x232   : > { %v817_v15 = vpop.f32.mrf.mxu2 }
 0x233   : > { %v3488_v43 = vadd.f32 %v817_v15, %v713_v42  ;;  %v948_v48 = vpop.f32.mrf.mxu3  ;;  %2640 = vmatmul.msk.bf16.gmra.mxu0 %vm585_vm0, %v3144_v61  ;;  %v1021_v13 = vrot.slane %v3486_v50, 7 }
 0x234   : > { %v3492_v14 = vadd.f32 %v948_v48, %v850_v12  ;;  %v719_v54 = vpop.f32.mrf.mxu1 }
 0x235   : > { %v4139_v12 = vrot.slane %v3488_v43, 7 }
 0x236   : > { %v4138_v26 = vrot.slane %v3492_v14, 7 }
 0x238   : > { %v885_v21 = vpop.f32.mrf.mxu0 }
 0x239   : > { %v956_v38 = vadd.f32 %v885_v21, %v3398_v0 }
 0x23a   : > { %v819_v4 = vpop.f32.mrf.mxu2 }
 0x23b   : > { %v1022_v42 = vrot.slane %v956_v38, 7  ;;  %v853_v57 = vadd.f32 %v819_v4, %v715_v49  ;;  %v950_v53 = vpop.f32.mrf.mxu3  ;;  %v2754_v4 = vld [vmem:[%s4123_s5 + $0x8] sm:$0xff] }
 0x23c   : > { %v982_v15 = vadd.f32 %v950_v53, %v851_v63  ;;  %v1135_v27 = vpop.f32.mrf.mxu1  ;;  %2185 = vmatpush.bf16.msra.mxu3 %v2754_v4 }
 0x23d   : > { %v1064_v48 = vrot.slane %v853_v57, 7  ;;  %v1023_v54 = vsel %vm1017_vm1, %v1021_v13, %v1022_v42 }
 0x23e   : > { %v1061_v47 = vrot.slane %v982_v15, 7 }
 0x23f   : > { %2569 = vmatmul.msk.bf16.gmra.mxu1 %vm585_vm0, %v3161_v5  ;;  %2593 = vmatmul.msk.bf16.gmra.mxu2 %vm585_vm0, %v3161_v5  ;;  %v3509_v0 = vsel %vm1017_vm1, %v4139_v12, %v1064_v48 }
 0x240   : > { %4145 = vst [vmem:[#allocation6_spill] sm:$0xff] %v3509_v0  ;;  %2617 = vmatmul.msk.bf16.gmra.mxu3 %vm585_vm0, %v3161_v5  ;;  %v3513_v63 = vpop.f32.mrf.mxu0  ;;  %v3518_v49 = vsel %vm1017_vm1, %v4138_v26, %v1061_v47  ;;  %v1098_v26 = vsel %vm1017_vm1, 0.0, %v1018_v19 }
 0x241   : > { %4146 = vst [vmem:[#allocation7_spill] sm:$0xff] %v3513_v63 }
 0x242   : > { %4147 = vst [vmem:[#allocation8_spill] sm:$0xff] %v3518_v49  ;;  %v1234_v50 = vpop.f32.mrf.mxu2 }
 0x243   : > { %v1367_v22 = vpop.f32.mrf.mxu3  ;;  %2641 = vmatmul.msk.bf16.gmra.mxu0 %vm585_vm0, %v3161_v5 }
 0x244   : > { %v1137_v21 = vpop.f32.mrf.mxu1 }
 0x248   : > { %v3522_v38 = vpop.f32.mrf.mxu0 }
 0x249   : > { %4148 = vst [vmem:[#allocation9_spill] sm:$0xff] %v3522_v38 }
 0x24a   : > { %v1236_v42 = vpop.f32.mrf.mxu2 }
 0x24b   : > { %v1368_v57 = vpop.f32.mrf.mxu3 }
 0x24c   : > { %v1140_v53 = vpop.f32.mrf.mxu1 }
 0x24f   : > { %2570 = vmatmul.msk.bf16.gmra.mxu1 %vm585_vm0, %v3173_v11  ;;  %2594 = vmatmul.msk.bf16.gmra.mxu2 %vm585_vm0, %v3173_v11 }
 0x250   : > { %2618 = vmatmul.msk.bf16.gmra.mxu3 %vm585_vm0, %v3173_v11  ;;  %v3533_v47 = vpop.f32.mrf.mxu0 }
 0x251   : > { %4149 = vst [vmem:[#allocation10_spill] sm:$0xff] %v3533_v47 }
 0x252   : > { %v1239_v15 = vpop.f32.mrf.mxu2 }
 0x253   : > { %v1316_v48 = vadd.f32 %v1239_v15, %v1135_v27  ;;  %v1370_v22 = vpop.f32.mrf.mxu3  ;;  %2642 = vmatmul.msk.bf16.gmra.mxu0 %vm585_vm0, %v3173_v11 }
 0x254   : > { %v1445_v4 = vadd.f32 %v1370_v22, %v1234_v50  ;;  %v1142_v57 = vpop.f32.mrf.mxu1  ;;  %v1099_v50 = vsel %vm1017_vm1, 0.0, %v1021_v13 }
 0x256   : > { %v3540_v12 = vadd.f32 %v1445_v4, %v1098_v26 }
 0x258   : > { %v3542_v38 = vpop.f32.mrf.mxu0 }
 0x259   : > { %4150 = vst [vmem:[#allocation11_spill] sm:$0xff] %v3542_v38 }
 0x25a   : > { %v1241_v63 = vpop.f32.mrf.mxu2 }
 0x25b   : > { %v1317_v5 = vadd.f32 %v1241_v63, %v1137_v21  ;;  %v1372_v49 = vpop.f32.mrf.mxu3 }
 0x25c   : > { %v1446_v47 = vadd.f32 %v1372_v49, %v1236_v42  ;;  %v1145_v0 = vpop.f32.mrf.mxu1 }
 0x25e   : > { %v3545_v27 = vadd.f32 %v1446_v47, %v3471_v55 }
 0x25f   : > { %2571 = vmatmul.msk.bf16.gmra.mxu1 %vm585_vm0, %v3188_v20  ;;  %2595 = vmatmul.msk.bf16.gmra.mxu2 %vm585_vm0, %v3188_v20 }
 0x260   : > { %2619 = vmatmul.msk.bf16.gmra.mxu3 %vm585_vm0, %v3188_v20  ;;  %v3553_v26 = vpop.f32.mrf.mxu0 }
 0x261   : > { %4151 = vst [vmem:[#allocation12_spill] sm:$0xff] %v3553_v26 }
 0x262   : > { %v1244_v40 = vpop.f32.mrf.mxu2 }
 0x263   : > { %v1318_v19 = vadd.f32 %v1244_v40, %v1140_v53  ;;  %v1375_v63 = vpop.f32.mrf.mxu3  ;;  %2643 = vmatmul.msk.bf16.gmra.mxu0 %vm585_vm0, %v3188_v20 }
 0x264   : > { %v1447_v49 = vadd.f32 %v1375_v63, %v1316_v48  ;;  %v1147_v55 = vpop.f32.mrf.mxu1 }
 0x266   : > { %v3558_v21 = vadd.f32 %v1447_v49, %v1099_v50 }
 0x268   : > { %v3560_v42 = vpop.f32.mrf.mxu0 }
 0x269   : > { %4152 = vst [vmem:[#allocation13_spill] sm:$0xff] %v3560_v42 }
 0x26a   : > { %v1246_v47 = vpop.f32.mrf.mxu2 }
 0x26b   : > { %v1319_v15 = vadd.f32 %v1246_v47, %v1142_v57  ;;  %v1377_v22 = vpop.f32.mrf.mxu3  ;;  %v4154_v57 = vrot.slane %v3418_v59, 7 }
 0x26c   : > { %v1448_v4 = vadd.f32 %v1377_v22, %v1317_v5  ;;  %v1150_v38 = vpop.f32.mrf.mxu1 }
 0x26d   : > { %v1100_v63 = vsel %vm1017_vm1, 0.0, %v4154_v57 }
 0x26e   : > { %v3562_v26 = vadd.f32 %v1448_v4, %v1023_v54 }
 0x26f   : > { %2572 = vmatmul.msk.bf16.gmra.mxu1 %vm585_vm0, %v3200_v29  ;;  %2596 = vmatmul.msk.bf16.gmra.mxu2 %vm585_vm0, %v3200_v29 }
 0x270   : > { %2620 = vmatmul.msk.bf16.gmra.mxu3 %vm585_vm0, %v3200_v29  ;;  %v3570_v13 = vpop.f32.mrf.mxu0 }
 0x271   : > { %4153 = vst [vmem:[#allocation14_spill] sm:$0xff] %v3570_v13 }
 0x272   : > { %v1249_v53 = vpop.f32.mrf.mxu2 }
 0x273   : > { %v1320_v48 = vadd.f32 %v1249_v53, %v1145_v0  ;;  %v1380_v40 = vpop.f32.mrf.mxu3  ;;  %2644 = vmatmul.msk.bf16.gmra.mxu0 %vm585_vm0, %v3200_v29 }
 0x274   : > { %v1449_v5 = vadd.f32 %v1380_v40, %v1318_v19  ;;  %v1152_v54 = vpop.f32.mrf.mxu1 }
 0x276   : > { %v3577_v49 = vadd.f32 %v1449_v5, %v1100_v63 }
 0x278   : > { %v3579_v50 = vpop.f32.mrf.mxu0 }
 0x279   : > { %4155 = vst [vmem:[#allocation15_spill] sm:$0xff] %v3579_v50 }
 0x27a   : > { %v1251_v47 = vpop.f32.mrf.mxu2 }
 0x27b   : > { %v1321_v22 = vadd.f32 %v1251_v47, %v1147_v55  ;;  %v1382_v4 = vpop.f32.mrf.mxu3 }
 0x27c   : > { %v1450_v13 = vadd.f32 %v1382_v4, %v1319_v15  ;;  %v1155_v42 = vpop.f32.mrf.mxu1 }
 0x27e   : > { %v3582_v0 = vadd.f32 %v1450_v13, %v3431_v32  ;;  %v4157_v13 = vrot.slane %v3348_v9, 7 }
 0x27f   : > { %2573 = vmatmul.msk.bf16.gmra.mxu1 %vm585_vm0, %v3220_v45  ;;  %2597 = vmatmul.msk.bf16.gmra.mxu2 %vm585_vm0, %v3220_v45 }
 0x280   : > { %2621 = vmatmul.msk.bf16.gmra.mxu3 %vm585_vm0, %v3220_v45  ;;  %v3590_v59 = vpop.f32.mrf.mxu0  ;;  %v1101_v40 = vsel %vm1017_vm1, 0.0, %v4157_v13 }
 0x281   : > { %4156 = vst [vmem:[#allocation16_spill] sm:$0xff] %v3590_v59 }
 0x282   : > { %v1254_v19 = vpop.f32.mrf.mxu2 }
 0x283   : > { %v1322_v53 = vadd.f32 %v1254_v19, %v1150_v38  ;;  %v1385_v55 = vpop.f32.mrf.mxu3  ;;  %2645 = vmatmul.msk.bf16.gmra.mxu0 %vm585_vm0, %v3220_v45 }
 0x284   : > { %v1451_v15 = vadd.f32 %v1385_v55, %v1320_v48  ;;  %v1157_v32 = vpop.f32.mrf.mxu1 }
 0x286   : > { %v3597_v5 = vadd.f32 %v1451_v15, %v1101_v40 }
 0x288   : > { %v3599_v57 = vpop.f32.mrf.mxu0 }
 0x289   : > { %4158 = vst [vmem:[#allocation17_spill] sm:$0xff] %v3599_v57 }
 0x28a   : > { %v1256_v63 = vpop.f32.mrf.mxu2 }
 0x28b   : > { %v1323_v47 = vadd.f32 %v1256_v63, %v1152_v54  ;;  %v1387_v4 = vpop.f32.mrf.mxu3 }
 0x28c   : > { %v1452_v59 = vadd.f32 %v1387_v4, %v1321_v22  ;;  %v1160_v50 = vpop.f32.mrf.mxu1 }
 0x28e   : > { %v3602_v38 = vadd.f32 %v1452_v59, %v3361_v31  ;;  %v4160_v59 = vrot.slane %v3249_v6, 7 }
 0x28f   : > { %2574 = vmatmul.msk.bf16.gmra.mxu1 %vm585_vm0, %v3239_v2  ;;  %2598 = vmatmul.msk.bf16.gmra.mxu2 %vm585_vm0, %v3239_v2 }
 0x290   : > { %2622 = vmatmul.msk.bf16.gmra.mxu3 %vm585_vm0, %v3239_v2  ;;  %v3610_v9 = vpop.f32.mrf.mxu0  ;;  %v1102_v55 = vsel %vm1017_vm1, 0.0, %v4160_v59 }
 0x291   : > { %4159 = vst [vmem:[#allocation18_spill] sm:$0xff] %v3610_v9 }
 0x292   : > { %v1259_v48 = vpop.f32.mrf.mxu2 }
 0x293   : > { %v1324_v19 = vadd.f32 %v1259_v48, %v1155_v42  ;;  %v1390_v54 = vpop.f32.mrf.mxu3  ;;  %2646 = vmatmul.msk.bf16.gmra.mxu0 %vm585_vm0, %v3239_v2 }
 0x294   : > { %v1453_v22 = vadd.f32 %v1390_v54, %v1322_v53  ;;  %v1162_v31 = vpop.f32.mrf.mxu1 }
 0x296   : > { %v3617_v15 = vadd.f32 %v1453_v22, %v1102_v55 }
 0x298   : > { %v3619_v13 = vpop.f32.mrf.mxu0 }
 0x299   : > { %4161 = vst [vmem:[#allocation19_spill] sm:$0xff] %v3619_v13 }
 0x29a   : > { %v1261_v40 = vpop.f32.mrf.mxu2 }
 0x29b   : > { %v1325_v63 = vadd.f32 %v1261_v40, %v1157_v32  ;;  %v1392_v4 = vpop.f32.mrf.mxu3 }
 0x29c   : > { %v1454_v9 = vadd.f32 %v1392_v4, %v1323_v47  ;;  %v1165_v57 = vpop.f32.mrf.mxu1 }
 0x29e   : > { %v3622_v42 = vadd.f32 %v1454_v9, %v3277_v34  ;;  %v4163_v9 = vrot.slane %v3281_v41, 7 }
 0x29f   : > { %2575 = vmatmul.msk.bf16.gmra.mxu1 %vm585_vm0, %v3259_v24  ;;  %2599 = vmatmul.msk.bf16.gmra.mxu2 %vm585_vm0, %v3259_v24 }
 0x2a0   : > { %2623 = vmatmul.msk.bf16.gmra.mxu3 %vm585_vm0, %v3259_v24  ;;  %v3630_v6 = vpop.f32.mrf.mxu0  ;;  %v1103_v54 = vsel %vm1017_vm1, 0.0, %v4163_v9 }
 0x2a1   : > { %4162 = vst [vmem:[#allocation20_spill] sm:$0xff] %v3630_v6 }
 0x2a2   : > { %v1264_v53 = vpop.f32.mrf.mxu2 }
 0x2a3   : > { %v1326_v48 = vadd.f32 %v1264_v53, %v1160_v50  ;;  %v1395_v32 = vpop.f32.mrf.mxu3  ;;  %2647 = vmatmul.msk.bf16.gmra.mxu0 %vm585_vm0, %v3259_v24 }
 0x2a4   : > { %v1455_v47 = vadd.f32 %v1395_v32, %v1324_v19  ;;  %v1167_v34 = vpop.f32.mrf.mxu1 }
 0x2a6   : > { %v3637_v22 = vadd.f32 %v1455_v47, %v1103_v54 }
 0x2a8   : > { %v3639_v59 = vpop.f32.mrf.mxu0 }
 0x2a9   : > { %4164 = vst [vmem:[#allocation21_spill] sm:$0xff] %v3639_v59 }
 0x2aa   : > { %v1266_v55 = vpop.f32.mrf.mxu2 }
 0x2ab   : > { %v1327_v40 = vadd.f32 %v1266_v55, %v1162_v31  ;;  %v1397_v4 = vpop.f32.mrf.mxu3 }
 0x2ac   : > { %v1456_v6 = vadd.f32 %v1397_v4, %v1325_v63  ;;  %v1170_v13 = vpop.f32.mrf.mxu1 }
 0x2ae   : > { %v3642_v50 = vadd.f32 %v1456_v6, %v3299_v3  ;;  %v4166_v6 = vrot.slane %v3303_v8, 7 }
 0x2af   : > { %2576 = vmatmul.msk.bf16.gmra.mxu1 %vm585_vm0, %v3285_v62  ;;  %2600 = vmatmul.msk.bf16.gmra.mxu2 %vm585_vm0, %v3285_v62 }
 0x2b0   : > { %2624 = vmatmul.msk.bf16.gmra.mxu3 %vm585_vm0, %v3285_v62  ;;  %v3650_v41 = vpop.f32.mrf.mxu0  ;;  %v1104_v32 = vsel %vm1017_vm1, 0.0, %v4166_v6 }
 0x2b1   : > { %4165 = vst [vmem:[#allocation22_spill] sm:$0xff] %v3650_v41 }
 0x2b2   : > { %v1269_v19 = vpop.f32.mrf.mxu2 }
 0x2b3   : > { %v1328_v53 = vadd.f32 %v1269_v19, %v1165_v57  ;;  %v1400_v31 = vpop.f32.mrf.mxu3  ;;  %2648 = vmatmul.msk.bf16.gmra.mxu0 %vm585_vm0, %v3285_v62 }
 0x2b4   : > { %v1457_v63 = vadd.f32 %v1400_v31, %v1326_v48  ;;  %v1172_v3 = vpop.f32.mrf.mxu1 }
 0x2b6   : > { %v3657_v47 = vadd.f32 %v1457_v63, %v1104_v32 }
 0x2b8   : > { %v3659_v9 = vpop.f32.mrf.mxu0 }
 0x2ba   : > { %v1271_v54 = vpop.f32.mrf.mxu2 }
 0x2bb   : > { %v1329_v55 = vadd.f32 %v1271_v54, %v1167_v34  ;;  %v1402_v4 = vpop.f32.mrf.mxu3  ;;  %v4168_v34 = vrot.slane %v3326_v33, 7 }
 0x2bc   : > { %v1458_v41 = vadd.f32 %v1402_v4, %v1327_v40  ;;  %v1175_v59 = vpop.f32.mrf.mxu1 }
 0x2bd   : > { %v1105_v40 = vsel %vm1017_vm1, 0.0, %v4168_v34 }
 0x2be   : > { %v3662_v57 = vadd.f32 %v1458_v41, %v3322_v23  ;;  %v2753_v41 = vld [vmem:[%s4123_s5] sm:$0xff] }
 0x2bf   : > { %2657 = vmatmul.msk.bf16.vlgmr.msra.gmra.mxu1 %vm585_vm0, %v3050_v44  ;;  %2681 = vmatmul.msk.bf16.vlgmr.msra.gmra.mxu2 %vm585_vm0, %v3050_v44 }
 0x2c0   : > { %v3668_v8 = vpop.f32.mrf.mxu0  ;;  %2186 = vmatpush.bf16.msra.mxu3 %v2753_v41 }
 0x2c1   : > { %4167 = vst [vmem:[#allocation23_spill] sm:$0xff] %v3668_v8 }
 0x2c2   : > { %v1274_v48 = vpop.f32.mrf.mxu2 }
 0x2c3   : > { %v1330_v19 = vadd.f32 %v1274_v48, %v1170_v13  ;;  %v1405_v31 = vpop.f32.mrf.mxu3 }
 0x2c4   : > { %v1459_v63 = vadd.f32 %v1405_v31, %v1328_v53  ;;  %v1177_v6 = vpop.f32.mrf.mxu1 }
 0x2c6   : > { %v3673_v32 = vadd.f32 %v1459_v63, %v1105_v40 }
 0x2c8   : > { %v3675_v23 = vpop.f32.mrf.mxu0 }
 0x2c9   : > { %4169 = vst [vmem:[#allocation24_spill] sm:$0xff] %v3675_v23 }
 0x2ca   : > { %v1276_v44 = vpop.f32.mrf.mxu2 }
 0x2cb   : > { %v1331_v54 = vadd.f32 %v1276_v44, %v1172_v3  ;;  %v1407_v4 = vpop.f32.mrf.mxu3  ;;  %v4171_v3 = vrot.slane %v3344_v1, 7 }
 0x2cc   : > { %v1460_v13 = vadd.f32 %v1407_v4, %v1329_v55  ;;  %v1180_v48 = vpop.f32.mrf.mxu1 }
 0x2cd   : > { %v1106_v55 = vsel %vm1017_vm1, 0.0, %v4171_v3 }
 0x2ce   : > { %v3681_v53 = vadd.f32 %v1460_v13, %v3340_v56 }
 0x2cf   : > { %2658 = vmatmul.msk.bf16.gmra.mxu1 %vm585_vm0, %v3079_v60  ;;  %2682 = vmatmul.msk.bf16.gmra.mxu2 %vm585_vm0, %v3079_v60 }
 0x2d0   : > { %v3687_v33 = vpop.f32.mrf.mxu0 }
 0x2d1   : > { %4170 = vst [vmem:[#allocation25_spill] sm:$0xff] %v3687_v33 }
 0x2d2   : > { %v1279_v31 = vpop.f32.mrf.mxu2 }
 0x2d3   : > { %v1332_v63 = vadd.f32 %v1279_v31, %v1175_v59  ;;  %v1410_v34 = vpop.f32.mrf.mxu3 }
 0x2d4   : > { %v1461_v40 = vadd.f32 %v1410_v34, %v1330_v19  ;;  %v1182_v41 = vpop.f32.mrf.mxu1 }
 0x2d6   : > { %v3692_v44 = vadd.f32 %v1461_v40, %v1106_v55 }
 0x2d8   : > { %v3694_v56 = vpop.f32.mrf.mxu0 }
 0x2da   : > { %v1281_v4 = vpop.f32.mrf.mxu2 }
 0x2db   : > { %v1333_v13 = vadd.f32 %v1281_v4, %v1177_v6  ;;  %v1412_v23 = vpop.f32.mrf.mxu3  ;;  %v4173_v6 = vrot.slane %v3374_v46, 7 }
 0x2dc   : > { %v1462_v8 = vadd.f32 %v1412_v23, %v1331_v54  ;;  %v1185_v60 = vpop.f32.mrf.mxu1 }
 0x2dd   : > { %v1107_v23 = vsel %vm1017_vm1, 0.0, %v4173_v6 }
 0x2de   : > { %v3697_v33 = vadd.f32 %v1462_v8, %v3370_v52 }
 0x2df   : > { %2659 = vmatmul.msk.bf16.gmra.mxu1 %vm585_vm0, %v3089_v7  ;;  %2683 = vmatmul.msk.bf16.gmra.mxu2 %vm585_vm0, %v3089_v7 }
 0x2e0   : > { %v3703_v1 = vpop.f32.mrf.mxu0 }
 0x2e1   : > { %4172 = vst [vmem:[#allocation26_spill] sm:$0xff] %v3703_v1 }
 0x2e2   : > { %v1284_v59 = vpop.f32.mrf.mxu2 }
 0x2e3   : > { %v1334_v19 = vadd.f32 %v1284_v59, %v1180_v48  ;;  %v1415_v31 = vpop.f32.mrf.mxu3 }
 0x2e4   : > { %v1463_v34 = vadd.f32 %v1415_v31, %v1332_v63  ;;  %v1187_v40 = vpop.f32.mrf.mxu1 }
 0x2e6   : > { %v3708_v54 = vadd.f32 %v1463_v34, %v1107_v23 }
 0x2e8   : > { %v3710_v52 = vpop.f32.mrf.mxu0 }
 0x2ea   : > { %v1286_v8 = vpop.f32.mrf.mxu2 }
 0x2eb   : > { %v1335_v3 = vadd.f32 %v1286_v8, %v1182_v41  ;;  %v1417_v55 = vpop.f32.mrf.mxu3  ;;  %v4175_v41 = vrot.slane %v3395_v17, 7 }
 0x2ec   : > { %v1464_v4 = vadd.f32 %v1417_v55, %v1333_v13  ;;  %v1190_v7 = vpop.f32.mrf.mxu1 }
 0x2ed   : > { %v1108_v13 = vsel %vm1017_vm1, 0.0, %v4175_v41 }
 0x2ee   : > { %v3713_v1 = vadd.f32 %v1464_v4, %v3388_v58 }
 0x2ef   : > { %2660 = vmatmul.msk.bf16.gmra.mxu1 %vm585_vm0, %v3098_v18  ;;  %2684 = vmatmul.msk.bf16.gmra.mxu2 %vm585_vm0, %v3098_v18 }
 0x2f0   : > { %v3719_v46 = vpop.f32.mrf.mxu0 }
 0x2f1   : > { %4174 = vst [vmem:[#allocation27_spill] sm:$0xff] %v3719_v46 }
 0x2f2   : > { %v1289_v48 = vpop.f32.mrf.mxu2 }
 0x2f3   : > { %v1336_v63 = vadd.f32 %v1289_v48, %v1185_v60  ;;  %v1420_v59 = vpop.f32.mrf.mxu3 }
 0x2f4   : > { %v1465_v31 = vadd.f32 %v1420_v59, %v1334_v19  ;;  %v1192_v34 = vpop.f32.mrf.mxu1 }
 0x2f6   : > { %v3724_v6 = vadd.f32 %v1465_v31, %v1108_v13 }
 0x2f8   : > { %v3726_v58 = vpop.f32.mrf.mxu0 }
 0x2fa   : > { %v1291_v23 = vpop.f32.mrf.mxu2 }
 0x2fb   : > { %v1337_v8 = vadd.f32 %v1291_v23, %v1187_v40  ;;  %v1422_v55 = vpop.f32.mrf.mxu3  ;;  %v4177_v40 = vrot.slane %v3415_v16, 7 }
 0x2fc   : > { %v1466_v4 = vadd.f32 %v1422_v55, %v1335_v3  ;;  %v1195_v18 = vpop.f32.mrf.mxu1 }
 0x2fd   : > { %v1109_v3 = vsel %vm1017_vm1, 0.0, %v4177_v40 }
 0x2fe   : > { %v3729_v46 = vadd.f32 %v1466_v4, %v3410_v10 }
 0x2ff   : > { %2661 = vmatmul.msk.bf16.gmra.mxu1 %vm585_vm0, %v3110_v28  ;;  %2685 = vmatmul.msk.bf16.gmra.mxu2 %vm585_vm0, %v3110_v28 }
 0x300   : > { %v3735_v17 = vpop.f32.mrf.mxu0 }
 0x301   : > { %4176 = vst [vmem:[#allocation28_spill] sm:$0xff] %v3735_v17 }
 0x302   : > { %v1294_v60 = vpop.f32.mrf.mxu2 }
 0x303   : > { %v1338_v19 = vadd.f32 %v1294_v60, %v1190_v7  ;;  %v1425_v48 = vpop.f32.mrf.mxu3 }
 0x304   : > { %v1467_v59 = vadd.f32 %v1425_v48, %v1336_v63  ;;  %v1197_v31 = vpop.f32.mrf.mxu1 }
 0x306   : > { %v3740_v41 = vadd.f32 %v1467_v59, %v1109_v3 }
 0x308   : > { %v3742_v10 = vpop.f32.mrf.mxu0 }
 0x30a   : > { %v1296_v13 = vpop.f32.mrf.mxu2 }
 0x30b   : > { %v1339_v23 = vadd.f32 %v1296_v13, %v1192_v34  ;;  %v1427_v55 = vpop.f32.mrf.mxu3  ;;  %v4179_v34 = vrot.slane %v3442_v35, 7 }
 0x30c   : > { %v1468_v4 = vadd.f32 %v1427_v55, %v1337_v8  ;;  %v1200_v28 = vpop.f32.mrf.mxu1 }
 0x30d   : > { %v1110_v8 = vsel %vm1017_vm1, 0.0, %v4179_v34 }
 0x30e   : > { %v3745_v17 = vadd.f32 %v1468_v4, %v3438_v37 }
 0x30f   : > { %2662 = vmatmul.msk.bf16.gmra.mxu1 %vm585_vm0, %v3122_v39  ;;  %2686 = vmatmul.msk.bf16.gmra.mxu2 %vm585_vm0, %v3122_v39 }
 0x310   : > { %v3751_v16 = vpop.f32.mrf.mxu0 }
 0x311   : > { %4178 = vst [vmem:[#allocation29_spill] sm:$0xff] %v3751_v16 }
 0x312   : > { %v1299_v7 = vpop.f32.mrf.mxu2 }
 0x313   : > { %v1340_v63 = vadd.f32 %v1299_v7, %v1195_v18  ;;  %v1430_v60 = vpop.f32.mrf.mxu3 }
 0x314   : > { %v1469_v48 = vadd.f32 %v1430_v60, %v1338_v19  ;;  %v1202_v59 = vpop.f32.mrf.mxu1 }
 0x316   : > { %v3756_v40 = vadd.f32 %v1469_v48, %v1110_v8 }
 0x318   : > { %v3758_v37 = vpop.f32.mrf.mxu0 }
 0x319   : > { %4180 = vst [vmem:[#allocation30_spill] sm:$0xff] %v3758_v37 }
 0x31a   : > { %v1301_v3 = vpop.f32.mrf.mxu2 }
 0x31b   : > { %v1341_v13 = vadd.f32 %v1301_v3, %v1197_v31  ;;  %v1432_v55 = vpop.f32.mrf.mxu3  ;;  %v4181_v31 = vrot.slane %v3464_v30, 7 }
 0x31c   : > { %v1470_v4 = vadd.f32 %v1432_v55, %v1339_v23  ;;  %v1205_v39 = vpop.f32.mrf.mxu1 }
 0x31d   : > { %v1111_v23 = vsel %vm1017_vm1, 0.0, %v4181_v31  ;;  %v4183_v31 = vrot.slane %v3492_v14, 7 }
 0x31e   : > { %v3761_v16 = vadd.f32 %v1470_v4, %v3457_v36 }
 0x31f   : > { %2663 = vmatmul.msk.bf16.gmra.mxu1 %vm585_vm0, %v3134_v51  ;;  %2687 = vmatmul.msk.bf16.gmra.mxu2 %vm585_vm0, %v3134_v51 }
 0x320   : > { %v3767_v35 = vpop.f32.mrf.mxu0 }
 0x322   : > { %v1304_v18 = vpop.f32.mrf.mxu2 }
 0x323   : > { %v1342_v19 = vadd.f32 %v1304_v18, %v1200_v28  ;;  %v1435_v7 = vpop.f32.mrf.mxu3 }
 0x324   : > { %v1471_v60 = vadd.f32 %v1435_v7, %v1340_v63  ;;  %v1207_v48 = vpop.f32.mrf.mxu1  ;;  %v4182_v7 = vrot.slane %v3488_v43, 7 }
 0x326   : > { %v3772_v34 = vadd.f32 %v1471_v60, %v1111_v23 }
 0x328   : > { %v3774_v36 = vpop.f32.mrf.mxu0 }
 0x32a   : > { %v1306_v8 = vpop.f32.mrf.mxu2 }
 0x32b   : > { %v1343_v3 = vadd.f32 %v1306_v8, %v1202_v59  ;;  %v1437_v55 = vpop.f32.mrf.mxu3  ;;  %v1113_v59 = vsel %vm1017_vm1, 0.0, %v4182_v7  ;;  %v4185_v7 = vld [vmem:[#allocation8_spill] sm:$0xff] }
 0x32c   : > { %v1472_v4 = vadd.f32 %v1437_v55, %v1341_v13  ;;  %v1210_v51 = vpop.f32.mrf.mxu1 }
 0x32e   : > { %v3777_v37 = vadd.f32 %v1472_v4, %v3483_v25  ;;  %v1112_v25 = vsel %vm1017_vm1, 0.0, %v4183_v31 }
 0x32f   : > { %2664 = vmatmul.msk.bf16.gmra.mxu1 %vm585_vm0, %v3144_v61  ;;  %2688 = vmatmul.msk.bf16.gmra.mxu2 %vm585_vm0, %v3144_v61 }
 0x330   : > { %v1605_v30 = vpop.f32.mrf.mxu0 }
 0x332   : > { %v1309_v28 = vpop.f32.mrf.mxu2 }
 0x333   : > { %v1344_v63 = vadd.f32 %v1309_v28, %v1205_v39  ;;  %v1440_v18 = vpop.f32.mrf.mxu3  ;;  %v4184_v28 = vld [vmem:[#allocation6_spill] sm:$0xff] }
 0x334   : > { %v1473_v60 = vadd.f32 %v1440_v18, %v1342_v19  ;;  %v1211_v13 = vpop.f32.mrf.mxu1  ;;  %v4187_v18 = vld [vmem:[#allocation5_spill] sm:$0xff] }
 0x335   : > { %v3789_v23 = vadd.f32 %v1344_v63, %v1113_v59 }
 0x336   : > { %v3791_v8 = vadd.f32 %v1473_v60, %v1112_v25 }
 0x338   : > { %v1606_v55 = vpop.f32.mrf.mxu0 }
 0x33a   : > { %v1311_v61 = vpop.f32.mrf.mxu2 }
 0x33b   : > { %v1345_v4 = vadd.f32 %v1311_v61, %v1207_v48  ;;  %v1442_v51 = vpop.f32.mrf.mxu3 }
 0x33c   : > { %v1474_v39 = vadd.f32 %v1442_v51, %v1343_v3  ;;  %v1629_v30 = vpop.f32.mrf.mxu1  ;;  %v3810_v51 = vld [vmem:[%s4122_s4] ss:$0 sm:$0xff] }
 0x33d   : > { %v3794_v43 = vadd.f32 %v1345_v4, %v4184_v28 }
 0x33e   : > { %v3797_v19 = vadd.f32 %v1474_v39, %v4185_v7 }
 0x33f   : > { %2665 = vmatmul.msk.bf16.gmra.mxu1 %vm585_vm0, %v4187_v18  ;;  %2689 = vmatmul.msk.bf16.gmra.mxu2 %vm585_vm0, %v4187_v18 }
 0x340   : > { %4186 = vst [vmem:[#allocation6_spill] sm:$0xff] %v3797_v19 }
 0x342   : > { %v1762_v14 = vpop.f32.mrf.mxu2 }
 0x344   : > { %v1631_v63 = vpop.f32.mrf.mxu1 }
 0x34a   : > { %v1763_v59 = vpop.f32.mrf.mxu2 }
 0x34c   : > { %v1634_v60 = vpop.f32.mrf.mxu1 }
 0x34f   : > { %2666 = vmatmul.msk.bf16.gmra.mxu1 %vm585_vm0, %v3173_v11  ;;  %2690 = vmatmul.msk.bf16.gmra.mxu2 %vm585_vm0, %v3173_v11 }
 0x352   : > { %v1765_v48 = vpop.f32.mrf.mxu2 }
 0x353   : > { %v1840_v13 = vadd.f32 %v1765_v48, %v1629_v30 }
 0x354   : > { %v1636_v3 = vpop.f32.mrf.mxu1 }
 0x355   : > { %v1905_v61 = vrot.slane %v1840_v13, 1 }
 0x35a   : > { %v1767_v31 = vpop.f32.mrf.mxu2 }
 0x35b   : > { %v1841_v25 = vadd.f32 %v1767_v31, %v1631_v63  ;;  %v4188_v31 = vld [vmem:[#allocation7_spill] sm:$0xff] }
 0x35c   : > { %v1639_v55 = vpop.f32.mrf.mxu1 }
 0x35d   : > { %v1906_v4 = vrot.slane %v1841_v25, 1  ;;  %v1711_v25 = vadd.f32 %v1634_v60, %v4188_v31  ;;  %v4190_v31 = vld [vmem:[#allocation10_spill] sm:$0xff] }
 0x35f   : > { %v1907_v39 = vsel %vm1904_vm2, %v1905_v61, %v1906_v4  ;;  %v1985_v28 = vsel %vm1904_vm2, %v1906_v4, 0.0  ;;  %2667 = vmatmul.msk.bf16.gmra.mxu1 %vm585_vm0, %v3188_v20  ;;  %2691 = vmatmul.msk.bf16.gmra.mxu2 %vm585_vm0, %v3188_v20  ;;  %v4189_v61 = vld [vmem:[#allocation9_spill] sm:$0xff] }
 0x360   : > { %v2001_v11 = vadd.f32 %v1907_v39, %v3540_v12  ;;  %v2002_v30 = vadd.f32 %v1985_v28, %v3545_v27  ;;  %v1712_v4 = vadd.f32 %v1636_v3, %v4189_v61  ;;  %v4191_v61 = vld [vmem:[#allocation11_spill] sm:$0xff] }
 0x362   : > { %v2036_v7 = vadd.f32 %v3810_v51, %v2001_v11  ;;  %v2037_v18 = vadd.f32 %v3810_v51, %v2002_v30  ;;  %v1770_v14 = vpop.f32.mrf.mxu2 }
 0x363   : > { %v1842_v20 = vadd.f32 %v1770_v14, %v1711_v25  ;;  %v1713_v25 = vadd.f32 %v1639_v55, %v4190_v31  ;;  %v4193_v31 = vld [vmem:[#allocation13_spill] sm:$0xff] }
 0x364   : > { %v2068_v63 = vmax.f32 %v2036_v7, 0.0  ;;  %v2069_v59 = vmax.f32 %v2037_v18, 0.0  ;;  %v1641_v48 = vpop.f32.mrf.mxu1 }
 0x365   : > { %v1908_v27 = vrot.slane %v1842_v20, 1 }
 0x366   : > { %v2100_v13 = vpack.c.bf16 %v2069_v59, %v2068_v63 }
 0x368   : > { %2705 = vmatmul.msk.bf16.vlgmr.msra.gmra.mxu3 %vm585_vm0, %v2100_v13 }
 0x36a   : > { %v1772_v19 = vpop.f32.mrf.mxu2 }
 0x36b   : > { %v1843_v12 = vadd.f32 %v1772_v19, %v1712_v4  ;;  %v1714_v4 = vadd.f32 %v1641_v48, %v4191_v61 }
 0x36c   : > { %v1644_v39 = vpop.f32.mrf.mxu1 }
 0x36d   : > { %v1909_v28 = vrot.slane %v1843_v12, 1 }
 0x36f   : > { %v1910_v11 = vsel %vm1904_vm2, %v1908_v27, %v1909_v28  ;;  %v1986_v30 = vsel %vm1904_vm2, %v1909_v28, 0.0  ;;  %2668 = vmatmul.msk.bf16.gmra.mxu1 %vm585_vm0, %v3200_v29  ;;  %2692 = vmatmul.msk.bf16.gmra.mxu2 %vm585_vm0, %v3200_v29 }
 0x370   : > { %v2003_v60 = vadd.f32 %v1910_v11, %v3558_v21  ;;  %v2004_v3 = vadd.f32 %v1986_v30, %v3562_v26 }
 0x372   : > { %v2038_v7 = vadd.f32 %v3810_v51, %v2003_v60  ;;  %v2039_v19 = vadd.f32 %v3810_v51, %v2004_v3  ;;  %v1775_v18 = vpop.f32.mrf.mxu2 }
 0x373   : > { %v1844_v29 = vadd.f32 %v1775_v18, %v1713_v25 }
 0x374   : > { %v2071_v14 = vmax.f32 %v2039_v19, 0.0  ;;  %v1646_v63 = vpop.f32.mrf.mxu1  ;;  %v2070_v59 = vmax.f32 %v2038_v7, 0.0 }
 0x375   : > { %v1911_v26 = vrot.slane %v1844_v29, 1  ;;  %v1716_v25 = vadd.f32 %v1646_v63, %v4193_v31 }
 0x376   : > { %v2101_v13 = vpack.c.bf16 %v2071_v14, %v2070_v59  ;;  %v4192_v59 = vld [vmem:[#allocation12_spill] sm:$0xff] }
 0x378   : > { %2706 = vmatmul.msk.bf16.gmra.mxu3 %vm585_vm0, %v2101_v13  ;;  %v1715_v13 = vadd.f32 %v1644_v39, %v4192_v59 }
 0x37a   : > { %v1777_v20 = vpop.f32.mrf.mxu2 }
 0x37b   : > { %v1845_v21 = vadd.f32 %v1777_v20, %v1714_v4 }
 0x37c   : > { %v1649_v12 = vpop.f32.mrf.mxu1 }
 0x37d   : > { %v1912_v27 = vrot.slane %v1845_v21, 1 }
 0x37f   : > { %v1913_v28 = vsel %vm1904_vm2, %v1911_v26, %v1912_v27  ;;  %v1987_v11 = vsel %vm1904_vm2, %v1912_v27, 0.0  ;;  %2669 = vmatmul.msk.bf16.gmra.mxu1 %vm585_vm0, %v3220_v45  ;;  %2693 = vmatmul.msk.bf16.gmra.mxu2 %vm585_vm0, %v3220_v45 }
 0x380   : > { %v2005_v55 = vadd.f32 %v1913_v28, %v3577_v49  ;;  %v2006_v48 = vadd.f32 %v1987_v11, %v3582_v0 }
 0x382   : > { %v2040_v30 = vadd.f32 %v3810_v51, %v2005_v55  ;;  %v2041_v60 = vadd.f32 %v3810_v51, %v2006_v48  ;;  %v1780_v3 = vpop.f32.mrf.mxu2 }
 0x383   : > { %v1846_v45 = vadd.f32 %v1780_v3, %v1715_v13 }
 0x384   : > { %v2073_v7 = vmax.f32 %v2041_v60, 0.0  ;;  %v1651_v19 = vpop.f32.mrf.mxu1  ;;  %v2072_v18 = vmax.f32 %v2040_v30, 0.0  ;;  %v4194_v60 = vld [vmem:[#allocation14_spill] sm:$0xff] }
 0x385   : > { %v1914_v0 = vrot.slane %v1846_v45, 1  ;;  %v1717_v3 = vadd.f32 %v1649_v12, %v4194_v60 }
 0x386   : > { %v2102_v14 = vpack.c.bf16 %v2073_v7, %v2072_v18  ;;  %v4195_v7 = vld [vmem:[#allocation15_spill] sm:$0xff] }
 0x387   : > { %v1718_v18 = vadd.f32 %v1651_v19, %v4195_v7 }
 0x388   : > { %2707 = vmatmul.msk.bf16.gmra.mxu3 %vm585_vm0, %v2102_v14 }
 0x38a   : > { %v1782_v61 = vpop.f32.mrf.mxu2 }
 0x38b   : > { %v1847_v49 = vadd.f32 %v1782_v61, %v1716_v25 }
 0x38c   : > { %v1654_v4 = vpop.f32.mrf.mxu1 }
 0x38d   : > { %v1915_v29 = vrot.slane %v1847_v49, 1 }
 0x38f   : > { %v1916_v20 = vsel %vm1904_vm2, %v1914_v0, %v1915_v29  ;;  %v1988_v21 = vsel %vm1904_vm2, %v1915_v29, 0.0  ;;  %2670 = vmatmul.msk.bf16.gmra.mxu1 %vm585_vm0, %v3239_v2  ;;  %2694 = vmatmul.msk.bf16.gmra.mxu2 %vm585_vm0, %v3239_v2 }
 0x390   : > { %v2007_v39 = vadd.f32 %v1916_v20, %v3597_v5  ;;  %v2008_v63 = vadd.f32 %v1988_v21, %v3602_v38 }
 0x392   : > { %v2042_v26 = vadd.f32 %v3810_v51, %v2007_v39  ;;  %v2043_v27 = vadd.f32 %v3810_v51, %v2008_v63  ;;  %v1785_v28 = vpop.f32.mrf.mxu2  ;;  %v4196_v39 = vld [vmem:[#allocation16_spill] sm:$0xff] }
 0x393   : > { %v1848_v2 = vadd.f32 %v1785_v28, %v1717_v3  ;;  %v1719_v63 = vadd.f32 %v1654_v4, %v4196_v39 }
 0x394   : > { %v2074_v11 = vmax.f32 %v2042_v26, 0.0  ;;  %v2075_v55 = vmax.f32 %v2043_v27, 0.0  ;;  %v1656_v48 = vpop.f32.mrf.mxu1  ;;  %v4197_v26 = vld [vmem:[#allocation17_spill] sm:$0xff] }
 0x395   : > { %v1917_v38 = vrot.slane %v1848_v2, 1  ;;  %v1720_v27 = vadd.f32 %v1656_v48, %v4197_v26 }
 0x396   : > { %v2103_v30 = vpack.c.bf16 %v2075_v55, %v2074_v11 }
 0x398   : > { %2708 = vmatmul.msk.bf16.gmra.mxu3 %vm585_vm0, %v2103_v30 }
 0x39a   : > { %v1787_v14 = vpop.f32.mrf.mxu2 }
 0x39b   : > { %v1849_v5 = vadd.f32 %v1787_v14, %v1718_v18 }
 0x39c   : > { %v1659_v59 = vpop.f32.mrf.mxu1 }
 0x39d   : > { %v1918_v13 = vrot.slane %v1849_v5, 1 }
 0x39f   : > { %v1919_v31 = vsel %vm1904_vm2, %v1917_v38, %v1918_v13  ;;  %v1989_v25 = vsel %vm1904_vm2, %v1918_v13, 0.0  ;;  %2671 = vmatmul.msk.bf16.gmra.mxu1 %vm585_vm0, %v3259_v24  ;;  %2695 = vmatmul.msk.bf16.gmra.mxu2 %vm585_vm0, %v3259_v24  ;;  %v4198_v13 = vld [vmem:[#allocation18_spill] sm:$0xff] }
 0x3a0   : > { %v2009_v12 = vadd.f32 %v1919_v31, %v3617_v15  ;;  %v2010_v19 = vadd.f32 %v1989_v25, %v3622_v42  ;;  %v1721_v31 = vadd.f32 %v1659_v59, %v4198_v13  ;;  %v4199_v25 = vld [vmem:[#allocation19_spill] sm:$0xff] }
 0x3a2   : > { %v2044_v45 = vadd.f32 %v3810_v51, %v2009_v12  ;;  %v2045_v61 = vadd.f32 %v3810_v51, %v2010_v19  ;;  %v1790_v49 = vpop.f32.mrf.mxu2 }
 0x3a3   : > { %v1850_v24 = vadd.f32 %v1790_v49, %v1719_v63 }
 0x3a4   : > { %v2076_v0 = vmax.f32 %v2044_v45, 0.0  ;;  %v2077_v29 = vmax.f32 %v2045_v61, 0.0  ;;  %v1661_v20 = vpop.f32.mrf.mxu1 }
 0x3a5   : > { %v1920_v42 = vrot.slane %v1850_v24, 1  ;;  %v1722_v12 = vadd.f32 %v1661_v20, %v4199_v25 }
 0x3a6   : > { %v2104_v21 = vpack.c.bf16 %v2077_v29, %v2076_v0 }
 0x3a8   : > { %2709 = vmatmul.msk.bf16.gmra.mxu3 %vm585_vm0, %v2104_v21 }
 0x3aa   : > { %v1792_v28 = vpop.f32.mrf.mxu2 }
 0x3ab   : > { %v1851_v15 = vadd.f32 %v1792_v28, %v1720_v27  ;;  %v4200_v28 = vld [vmem:[#allocation20_spill] sm:$0xff] }
 0x3ac   : > { %v1664_v11 = vpop.f32.mrf.mxu1 }
 0x3ad   : > { %v1921_v55 = vrot.slane %v1851_v15, 1  ;;  %v1723_v15 = vadd.f32 %v1664_v11, %v4200_v28 }
 0x3af   : > { %v1922_v30 = vsel %vm1904_vm2, %v1920_v42, %v1921_v55  ;;  %v1990_v60 = vsel %vm1904_vm2, %v1921_v55, 0.0  ;;  %2672 = vmatmul.msk.bf16.gmra.mxu1 %vm585_vm0, %v3285_v62  ;;  %2696 = vmatmul.msk.bf16.gmra.mxu2 %vm585_vm0, %v3285_v62  ;;  %v4201_v42 = vld [vmem:[#allocation21_spill] sm:$0xff] }
 0x3b0   : > { %v2011_v4 = vadd.f32 %v1922_v30, %v3637_v22  ;;  %v2012_v48 = vadd.f32 %v1990_v60, %v3642_v50 }
 0x3b2   : > { %v2046_v3 = vadd.f32 %v3810_v51, %v2011_v4  ;;  %v2047_v7 = vadd.f32 %v3810_v51, %v2012_v48  ;;  %v1795_v18 = vpop.f32.mrf.mxu2 }
 0x3b3   : > { %v1852_v62 = vadd.f32 %v1795_v18, %v1721_v31 }
 0x3b4   : > { %v2078_v2 = vmax.f32 %v2046_v3, 0.0  ;;  %v2079_v14 = vmax.f32 %v2047_v7, 0.0  ;;  %v1666_v5 = vpop.f32.mrf.mxu1 }
 0x3b5   : > { %v1923_v50 = vrot.slane %v1852_v62, 1  ;;  %v1724_v55 = vadd.f32 %v1666_v5, %v4201_v42 }
 0x3b6   : > { %v2105_v38 = vpack.c.bf16 %v2079_v14, %v2078_v2 }
 0x3b8   : > { %2710 = vmatmul.msk.bf16.gmra.mxu3 %vm585_vm0, %v2105_v38 }
 0x3ba   : > { %v1797_v19 = vpop.f32.mrf.mxu2 }
 0x3bb   : > { %v1853_v22 = vadd.f32 %v1797_v19, %v1722_v12  ;;  %v4202_v12 = vld [vmem:[#allocation22_spill] sm:$0xff] }
 0x3bc   : > { %v1669_v45 = vpop.f32.mrf.mxu1 }
 0x3bd   : > { %v1924_v61 = vrot.slane %v1853_v22, 1  ;;  %v1725_v62 = vadd.f32 %v1669_v45, %v4202_v12 }
 0x3bf   : > { %v1925_v49 = vsel %vm1904_vm2, %v1923_v50, %v1924_v61  ;;  %v1991_v0 = vsel %vm1904_vm2, %v1924_v61, 0.0 }
 0x3c0   : > { %v2013_v29 = vadd.f32 %v1925_v49, %v3657_v47  ;;  %v2014_v21 = vadd.f32 %v1991_v0, %v3662_v57 }
 0x3c2   : > { %v2048_v59 = vadd.f32 %v3810_v51, %v2013_v29  ;;  %v2049_v39 = vadd.f32 %v3810_v51, %v2014_v21  ;;  %v1800_v63 = vpop.f32.mrf.mxu2 }
 0x3c3   : > { %v1854_v30 = vadd.f32 %v1800_v63, %v1723_v15 }
 0x3c4   : > { %v2080_v20 = vmax.f32 %v2048_v59, 0.0  ;;  %v2081_v26 = vmax.f32 %v2049_v39, 0.0  ;;  %v1671_v27 = vpop.f32.mrf.mxu1 }
 0x3c5   : > { %v1926_v57 = vrot.slane %v1854_v30, 1  ;;  %v1726_v19 = vadd.f32 %v1671_v27, %v3659_v9 }
 0x3c6   : > { %v2106_v24 = vpack.c.bf16 %v2081_v26, %v2080_v20 }
 0x3c8   : > { %2711 = vmatmul.msk.bf16.gmra.mxu3 %vm585_vm0, %v2106_v24  ;;  %v4203_v24 = vld [vmem:[#allocation23_spill] sm:$0xff] }
 0x3ca   : > { %v1802_v60 = vpop.f32.mrf.mxu2 }
 0x3cb   : > { %v1855_v47 = vadd.f32 %v1802_v60, %v1724_v55 }
 0x3cc   : > { %v1674_v4 = vpop.f32.mrf.mxu1 }
 0x3cd   : > { %v1927_v48 = vrot.slane %v1855_v47, 1  ;;  %v1727_v28 = vadd.f32 %v1674_v4, %v4203_v24 }
 0x3cf   : > { %v1928_v3 = vsel %vm1904_vm2, %v1926_v57, %v1927_v48  ;;  %v1992_v7 = vsel %vm1904_vm2, %v1927_v48, 0.0 }
 0x3d0   : > { %v2015_v18 = vadd.f32 %v1928_v3, %v3673_v32  ;;  %v2016_v2 = vadd.f32 %v1992_v7, %v3681_v53  ;;  %v2806_v3 = vld [vmem:[%s3018_s17] sm:$0xff] }
 0x3d2   : > { %v2050_v11 = vadd.f32 %v3810_v51, %v2015_v18  ;;  %v2051_v14 = vadd.f32 %v3810_v51, %v2016_v2  ;;  %v1805_v38 = vpop.f32.mrf.mxu2 }
 0x3d3   : > { %v1856_v22 = vadd.f32 %v1805_v38, %v1725_v62 }
 0x3d4   : > { %v2082_v5 = vmax.f32 %v2050_v11, 0.0  ;;  %v2083_v13 = vmax.f32 %v2051_v14, 0.0  ;;  %v1676_v31 = vpop.f32.mrf.mxu1 }
 0x3d5   : > { %v1929_v53 = vrot.slane %v1856_v22, 1 }
 0x3d6   : > { %v2107_v25 = vpack.c.bf16 %v2083_v13, %v2082_v5 }
 0x3d8   : > { %2712 = vmatmul.msk.bf16.gmra.mxu3 %vm585_vm0, %v2107_v25 }
 0x3da   : > { %v1807_v50 = vpop.f32.mrf.mxu2 }
 0x3db   : > { %v1857_v32 = vadd.f32 %v1807_v50, %v1726_v19 }
 0x3dc   : > { %v1679_v61 = vpop.f32.mrf.mxu1 }
 0x3dd   : > { %v1930_v49 = vrot.slane %v1857_v32, 1  ;;  %v4205_v32 = vld [vmem:[#allocation25_spill] sm:$0xff] }
 0x3df   : > { %v1931_v0 = vsel %vm1904_vm2, %v1929_v53, %v1930_v49  ;;  %v1993_v29 = vsel %vm1904_vm2, %v1930_v49, 0.0  ;;  %v1729_v53 = vadd.f32 %v1679_v61, %v4205_v32 }
 0x3e0   : > { %v2017_v21 = vadd.f32 %v1931_v0, %v3692_v44  ;;  %v2018_v59 = vadd.f32 %v1993_v29, %v3697_v33  ;;  %v3919_v44 = vld [vmem:[%s4124_s6] ss:$0 sm:$0xff]  ;;  %v4204_v33 = vld [vmem:[#allocation24_spill] sm:$0xff] }
 0x3e1   : > { %v1728_v15 = vadd.f32 %v1676_v31, %v4204_v33 }
 0x3e2   : > { %v2052_v45 = vadd.f32 %v3810_v51, %v2017_v21  ;;  %v2053_v9 = vadd.f32 %v3810_v51, %v2018_v59  ;;  %v1810_v39 = vpop.f32.mrf.mxu2 }
 0x3e3   : > { %v1858_v42 = vadd.f32 %v1810_v39, %v1727_v28 }
 0x3e4   : > { %v2084_v63 = vmax.f32 %v2052_v45, 0.0  ;;  %v2085_v20 = vmax.f32 %v2053_v9, 0.0  ;;  %v1681_v26 = vpop.f32.mrf.mxu1 }
 0x3e5   : > { %v1932_v4 = vrot.slane %v1858_v42, 1  ;;  %v1730_v0 = vadd.f32 %v1681_v26, %v3694_v56 }
 0x3e6   : > { %v2108_v27 = vpack.c.bf16 %v2085_v20, %v2084_v63 }
 0x3e8   : > { %2713 = vmatmul.msk.bf16.gmra.mxu3 %vm585_vm0, %v2108_v27  ;;  %v2808_v27 = vld [vmem:[%s3018_s17 + $0x10] sm:$0xff] }
 0x3ea   : > { %v1812_v55 = vpop.f32.mrf.mxu2 }
 0x3eb   : > { %v1859_v30 = vadd.f32 %v1812_v55, %v1728_v15  ;;  %v2188_v60 = vpop.f32.mrf.mxu3 }
 0x3ec   : > { %v2189_v47 = vadd.f32 %v3919_v44, %v2188_v60  ;;  %v1684_v57 = vpop.f32.mrf.mxu1 }
 0x3ed   : > { %v1933_v48 = vrot.slane %v1859_v30, 1 }
 0x3ee   : > { %v2268_v7 = vadd.f32 %v2806_v3, %v2189_v47  ;;  %v2809_v3 = vld [vmem:[%s3018_s17 + $0x18] sm:$0xff] }
 0x3ef   : > { %v1934_v18 = vsel %vm1904_vm2, %v1932_v4, %v1933_v48  ;;  %v1994_v2 = vsel %vm1904_vm2, %v1933_v48, 0.0 }
 0x3f0   : > { %v2019_v11 = vadd.f32 %v1934_v18, %v3708_v54  ;;  %v2020_v14 = vadd.f32 %v1994_v2, %v3713_v1  ;;  %v2300_v38 = vmax.f32 %v2268_v7, 0.0  ;;  %v2807_v54 = vld [vmem:[%s3018_s17 + $0x8] sm:$0xff] }
 0x3f1   : > { %v4206_v18 = vld [vmem:[#allocation26_spill] sm:$0xff] }
 0x3f2   : > { %v2054_v5 = vadd.f32 %v3810_v51, %v2019_v11  ;;  %v2055_v13 = vadd.f32 %v3810_v51, %v2020_v14  ;;  %2332 = vst [vmem:[%s3933_s15] sm:$0xff] %v2300_v38  ;;  %v1815_v31 = vpop.f32.mrf.mxu2 }
 0x3f3   : > { %v2190_v25 = vpop.f32.mrf.mxu3  ;;  %v1860_v29 = vadd.f32 %v1815_v31, %v1729_v53 }
 0x3f4   : > { %v2086_v12 = vmax.f32 %v2054_v5, 0.0  ;;  %v2087_v62 = vmax.f32 %v2055_v13, 0.0  ;;  %v2191_v19 = vadd.f32 %v3919_v44, %v2190_v25  ;;  %v1686_v22 = vpop.f32.mrf.mxu1 }
 0x3f5   : > { %v1935_v63 = vrot.slane %v1860_v29, 1  ;;  %v1732_v11 = vadd.f32 %v1686_v22, %v3710_v52 }
 0x3f6   : > { %v2269_v1 = vadd.f32 %v2807_v54, %v2191_v19  ;;  %v2109_v50 = vpack.c.bf16 %v2087_v62, %v2086_v12  ;;  %v2810_v19 = vld [vmem:[%s3018_s17 + $0x20] sm:$0xff] }
 0x3f8   : > { %v2301_v49 = vmax.f32 %v2269_v1, 0.0  ;;  %2714 = vmatmul.msk.bf16.gmra.mxu3 %vm585_vm0, %v2109_v50 }
 0x3fa   : > { %2333 = vst [vmem:[%s3933_s15 + $0x8] sm:$0xff] %v2301_v49  ;;  %v1817_v21 = vpop.f32.mrf.mxu2 }
 0x3fb   : > { %v1861_v59 = vadd.f32 %v1817_v21, %v1730_v0  ;;  %v2193_v45 = vpop.f32.mrf.mxu3 }
 0x3fc   : > { %v2194_v9 = vadd.f32 %v3919_v44, %v2193_v45  ;;  %v1689_v39 = vpop.f32.mrf.mxu1 }
 0x3fd   : > { %v1936_v20 = vrot.slane %v1861_v59, 1 }
 0x3fe   : > { %v2270_v24 = vadd.f32 %v2808_v27, %v2194_v9  ;;  %v2811_v9 = vld [vmem:[%s3018_s17 + $0x28] sm:$0xff] }
 0x3ff   : > { %v1937_v61 = vsel %vm1904_vm2, %v1935_v63, %v1936_v20  ;;  %v1995_v28 = vsel %vm1904_vm2, %v1936_v20, 0.0  ;;  %v4207_v20 = vld [vmem:[#allocation27_spill] sm:$0xff] }
 0x400   : > { %v2021_v56 = vadd.f32 %v1937_v61, %v3724_v6  ;;  %v2022_v26 = vadd.f32 %v1995_v28, %v3729_v46  ;;  %v2302_v33 = vmax.f32 %v2270_v24, 0.0  ;;  %v1731_v46 = vadd.f32 %v1684_v57, %v4206_v18 }
 0x402   : > { %v2056_v15 = vadd.f32 %v3810_v51, %v2021_v56  ;;  %v2057_v42 = vadd.f32 %v3810_v51, %v2022_v26  ;;  %2334 = vst [vmem:[%s3933_s15 + $0x10] sm:$0xff] %v2302_v33  ;;  %v1820_v55 = vpop.f32.mrf.mxu2 }
 0x403   : > { %v2195_v30 = vpop.f32.mrf.mxu3  ;;  %v1862_v14 = vadd.f32 %v1820_v55, %v1731_v46 }
 0x404   : > { %v2088_v60 = vmax.f32 %v2056_v15, 0.0  ;;  %v2089_v47 = vmax.f32 %v2057_v42, 0.0  ;;  %v2196_v4 = vadd.f32 %v3919_v44, %v2195_v30  ;;  %v1691_v48 = vpop.f32.mrf.mxu1  ;;  %v2812_v30 = vld [vmem:[%s3018_s17 + $0x30] sm:$0xff] }
 0x405   : > { %v1938_v12 = vrot.slane %v1862_v14, 1  ;;  %v1734_v24 = vadd.f32 %v1691_v48, %v3726_v58 }
 0x406   : > { %v2271_v7 = vadd.f32 %v2809_v3, %v2196_v4  ;;  %v2110_v6 = vpack.c.bf16 %v2089_v47, %v2088_v60 }
 0x408   : > { %v2303_v2 = vmax.f32 %v2271_v7, 0.0  ;;  %2715 = vmatmul.msk.bf16.gmra.mxu3 %vm585_vm0, %v2110_v6 }
 0x40a   : > { %2335 = vst [vmem:[%s3933_s15 + $0x18] sm:$0xff] %v2303_v2  ;;  %v1822_v38 = vpop.f32.mrf.mxu2 }
 0x40b   : > { %v1863_v5 = vadd.f32 %v1822_v38, %v1732_v11  ;;  %v2198_v13 = vpop.f32.mrf.mxu3  ;;  %v2813_v38 = vld [vmem:[%s3018_s17 + $0x38] sm:$0xff] }
 0x40c   : > { %v2199_v31 = vadd.f32 %v3919_v44, %v2198_v13  ;;  %v1694_v25 = vpop.f32.mrf.mxu1  ;;  %v4208_v13 = vld [vmem:[#allocation28_spill] sm:$0xff] }
 0x40d   : > { %v1939_v62 = vrot.slane %v1863_v5, 1 }
 0x40e   : > { %v2272_v54 = vadd.f32 %v2810_v19, %v2199_v31 }
 0x40f   : > { %v1940_v57 = vsel %vm1904_vm2, %v1938_v12, %v1939_v62  ;;  %v1996_v1 = vsel %vm1904_vm2, %v1939_v62, 0.0 }
 0x410   : > { %v2023_v52 = vadd.f32 %v1940_v57, %v3740_v41  ;;  %v2024_v22 = vadd.f32 %v1996_v1, %v3745_v17  ;;  %v2304_v50 = vmax.f32 %v2272_v54, 0.0  ;;  %v1733_v17 = vadd.f32 %v1689_v39, %v4207_v20 }
 0x412   : > { %v2058_v32 = vadd.f32 %v3810_v51, %v2023_v52  ;;  %v2059_v53 = vadd.f32 %v3810_v51, %v2024_v22  ;;  %2336 = vst [vmem:[%s3933_s15 + $0x20] sm:$0xff] %v2304_v50  ;;  %v1825_v49 = vpop.f32.mrf.mxu2 }
 0x413   : > { %v2200_v0 = vpop.f32.mrf.mxu3  ;;  %v1864_v61 = vadd.f32 %v1825_v49, %v1733_v17 }
 0x414   : > { %v2090_v29 = vmax.f32 %v2058_v32, 0.0  ;;  %v2091_v21 = vmax.f32 %v2059_v53, 0.0  ;;  %v2201_v59 = vadd.f32 %v3919_v44, %v2200_v0  ;;  %v1696_v45 = vpop.f32.mrf.mxu1  ;;  %v2814_v32 = vld [vmem:[%s3018_s17 + $0x40] sm:$0xff] }
 0x415   : > { %v1941_v42 = vrot.slane %v1864_v61, 1  ;;  %v1736_v12 = vadd.f32 %v1696_v45, %v3742_v10 }
 0x416   : > { %v2273_v63 = vadd.f32 %v2811_v9, %v2201_v59  ;;  %v2111_v41 = vpack.c.bf16 %v2091_v21, %v2090_v29 }
 0x418   : > { %v2305_v27 = vmax.f32 %v2273_v63, 0.0  ;;  %2716 = vmatmul.msk.bf16.gmra.mxu3 %vm585_vm0, %v2111_v41 }
 0x41a   : > { %2337 = vst [vmem:[%s3933_s15 + $0x28] sm:$0xff] %v2305_v27  ;;  %v1827_v28 = vpop.f32.mrf.mxu2 }
 0x41b   : > { %v1865_v56 = vadd.f32 %v1827_v28, %v1734_v24  ;;  %v2203_v26 = vpop.f32.mrf.mxu3  ;;  %v2815_v24 = vld [vmem:[%s3018_s17 + $0x48] sm:$0xff]  ;;  %v4209_v28 = vld [vmem:[#allocation29_spill] sm:$0xff] }
 0x41c   : > { %v2204_v33 = vadd.f32 %v3919_v44, %v2203_v26  ;;  %v1699_v15 = vpop.f32.mrf.mxu1 }
 0x41d   : > { %v1942_v55 = vrot.slane %v1865_v56, 1  ;;  %v1737_v56 = vadd.f32 %v1699_v15, %v4209_v28  ;;  %v2822_v28 = vld [vmem:[%s3018_s17 + $0x80] sm:$0xff] }
 0x41e   : > { %v2274_v60 = vadd.f32 %v2812_v30, %v2204_v33 }
 0x41f   : > { %v1943_v39 = vsel %vm1904_vm2, %v1941_v42, %v1942_v55  ;;  %v1997_v47 = vsel %vm1904_vm2, %v1942_v55, 0.0 }
 0x420   : > { %v2025_v58 = vadd.f32 %v1943_v39, %v3756_v40  ;;  %v2026_v4 = vadd.f32 %v1997_v47, %v3761_v16  ;;  %v2306_v48 = vmax.f32 %v2274_v60, 0.0  ;;  %v1735_v16 = vadd.f32 %v1694_v25, %v4208_v13 }
 0x422   : > { %v2060_v3 = vadd.f32 %v3810_v51, %v2025_v58  ;;  %v2061_v7 = vadd.f32 %v3810_v51, %v2026_v4  ;;  %2338 = vst [vmem:[%s3933_s15 + $0x30] sm:$0xff] %v2306_v48  ;;  %v1830_v6 = vpop.f32.mrf.mxu2 }
 0x423   : > { %v2205_v18 = vpop.f32.mrf.mxu3  ;;  %v1866_v62 = vadd.f32 %v1830_v6, %v1735_v16 }
 0x424   : > { %v2092_v46 = vmax.f32 %v2060_v3, 0.0  ;;  %v2093_v2 = vmax.f32 %v2061_v7, 0.0  ;;  %v2206_v11 = vadd.f32 %v3919_v44, %v2205_v18  ;;  %v1701_v14 = vpop.f32.mrf.mxu1 }
 0x425   : > { %v1944_v22 = vrot.slane %v1866_v62, 1 }
 0x426   : > { %v2275_v5 = vadd.f32 %v2813_v38, %v2206_v11  ;;  %v2112_v40 = vpack.c.bf16 %v2093_v2, %v2092_v46  ;;  %v2816_v11 = vld [vmem:[%s3018_s17 + $0x50] sm:$0xff] }
 0x428   : > { %v2307_v31 = vmax.f32 %v2275_v5, 0.0  ;;  %2717 = vmatmul.msk.bf16.gmra.mxu3 %vm585_vm0, %v2112_v40  ;;  %v4211_v5 = vld [vmem:[#allocation6_spill] sm:$0xff] }
 0x42a   : > { %2339 = vst [vmem:[%s3933_s15 + $0x38] sm:$0xff] %v2307_v31  ;;  %v1832_v19 = vpop.f32.mrf.mxu2 }
 0x42b   : > { %v1867_v54 = vadd.f32 %v1832_v19, %v1736_v12  ;;  %v2208_v57 = vpop.f32.mrf.mxu3 }
 0x42c   : > { %v2209_v1 = vadd.f32 %v3919_v44, %v2208_v57  ;;  %v1704_v52 = vpop.f32.mrf.mxu1 }
 0x42d   : > { %v1945_v50 = vrot.slane %v1867_v54, 1  ;;  %v1739_v9 = vadd.f32 %v1704_v52, %v3767_v35  ;;  %v4210_v35 = vld [vmem:[#allocation30_spill] sm:$0xff] }
 0x42e   : > { %v2276_v53 = vadd.f32 %v2814_v32, %v2209_v1  ;;  %v1738_v55 = vadd.f32 %v1701_v14, %v4210_v35  ;;  %v2817_v1 = vld [vmem:[%s3018_s17 + $0x58] sm:$0xff]  ;;  %v2818_v32 = vld [vmem:[%s3018_s17 + $0x60] sm:$0xff]  ;;  %v2823_v35 = vld [vmem:[%s3018_s17 + $0x88] sm:$0xff] }
 0x42f   : > { %v1946_v25 = vsel %vm1904_vm2, %v1944_v22, %v1945_v50  ;;  %v1998_v49 = vsel %vm1904_vm2, %v1945_v50, 0.0  ;;  %v1950_v26 = vrot.slane %v1739_v9, 1  ;;  %v2820_v9 = vld [vmem:[%s3018_s17 + $0x70] sm:$0xff] }
 0x430   : > { %v2027_v10 = vadd.f32 %v1946_v25, %v3772_v34  ;;  %v2028_v0 = vadd.f32 %v1998_v49, %v3777_v37  ;;  %v2308_v29 = vmax.f32 %v2276_v53, 0.0 }
 0x432   : > { %v2062_v21 = vadd.f32 %v3810_v51, %v2027_v10  ;;  %v2063_v59 = vadd.f32 %v3810_v51, %v2028_v0  ;;  %2340 = vst [vmem:[%s3933_s15 + $0x40] sm:$0xff] %v2308_v29  ;;  %v1835_v45 = vpop.f32.mrf.mxu2  ;;  %v2819_v0 = vld [vmem:[%s3018_s17 + $0x68] sm:$0xff] }
 0x433   : > { %v2210_v63 = vpop.f32.mrf.mxu3  ;;  %v1868_v30 = vadd.f32 %v1835_v45, %v1737_v56 }
 0x434   : > { %v2094_v41 = vmax.f32 %v2062_v21, 0.0  ;;  %v2095_v20 = vmax.f32 %v2063_v59, 0.0  ;;  %v2211_v17 = vadd.f32 %v3919_v44, %v2210_v63  ;;  %v1706_v27 = vpop.f32.mrf.mxu1 }
 0x435   : > { %v1740_v34 = vadd.f32 %v1706_v27, %v3774_v36  ;;  %v1947_v6 = vrot.slane %v1868_v30, 1  ;;  %v2821_v27 = vld [vmem:[%s3018_s17 + $0x78] sm:$0xff] }
 0x436   : > { %v2277_v37 = vadd.f32 %v2815_v24, %v2211_v17  ;;  %v2113_v61 = vpack.c.bf16 %v2095_v20, %v2094_v41 }
 0x437   : > { %v1951_v33 = vrot.slane %v1740_v34, 1 }
 0x438   : > { %v2309_v42 = vmax.f32 %v2277_v37, 0.0  ;;  %2718 = vmatmul.msk.bf16.gmra.mxu3 %vm585_vm0, %v2113_v61 }
 0x439   : > { %v1952_v60 = vsel %vm1904_vm2, %v1950_v26, %v1951_v33  ;;  %v2000_v39 = vsel %vm1904_vm2, %v1951_v33, 0.0 }
 0x43a   : > { %2341 = vst [vmem:[%s3933_s15 + $0x48] sm:$0xff] %v2309_v42  ;;  %v2031_v36 = vadd.f32 %v1952_v60, %v3789_v23  ;;  %v2032_v47 = vadd.f32 %v2000_v39, %v3794_v43  ;;  %v1837_v58 = vpop.f32.mrf.mxu2 }
 0x43b   : > { %v1869_v15 = vadd.f32 %v1837_v58, %v1738_v55  ;;  %v2213_v4 = vpop.f32.mrf.mxu3 }
 0x43c   : > { %v2066_v48 = vadd.f32 %v3810_v51, %v2031_v36  ;;  %v2067_v3 = vadd.f32 %v3810_v51, %v2032_v47  ;;  %v2214_v7 = vadd.f32 %v3919_v44, %v2213_v4  ;;  %v2824_v36 = vld [vmem:[%s3018_s17 + $0x90] sm:$0xff] }
 0x43d   : > { %v1948_v18 = vrot.slane %v1869_v15, 1 }
 0x43e   : > { %v2098_v46 = vmax.f32 %v2066_v48, 0.0  ;;  %v2099_v2 = vmax.f32 %v2067_v3, 0.0  ;;  %v2278_v14 = vadd.f32 %v2816_v11, %v2214_v7  ;;  %v2825_v48 = vld [vmem:[%s3018_s17 + $0x98] sm:$0xff] }
 0x43f   : > { %v1949_v23 = vsel %vm1904_vm2, %v1947_v6, %v1948_v18  ;;  %v1999_v43 = vsel %vm1904_vm2, %v1948_v18, 0.0 }
 0x440   : > { %v2029_v38 = vadd.f32 %v1949_v23, %v3791_v8  ;;  %v2030_v40 = vadd.f32 %v1999_v43, %v4211_v5  ;;  %v2310_v13 = vmax.f32 %v2278_v14, 0.0  ;;  %v2115_v16 = vpack.c.bf16 %v2099_v2, %v2098_v46  ;;  %v2826_v46 = vld [vmem:[%s3018_s17 + $0xa0] sm:$0xff]  ;;  %v2827_v43 = vld [vmem:[%s3018_s17 + $0xa8] sm:$0xff] }
 0x442   : > { %v2064_v31 = vadd.f32 %v3810_v51, %v2029_v38  ;;  %v2065_v12 = vadd.f32 %v3810_v51, %v2030_v40  ;;  %2342 = vst [vmem:[%s3933_s15 + $0x50] sm:$0xff] %v2310_v13 }
 0x443   : > { %v2215_v62 = vpop.f32.mrf.mxu3 }
 0x444   : > { %v2096_v19 = vmax.f32 %v2064_v31, 0.0  ;;  %v2097_v54 = vmax.f32 %v2065_v12, 0.0  ;;  %v2216_v57 = vadd.f32 %v3919_v44, %v2215_v62 }
 0x446   : > { %v2279_v8 = vadd.f32 %v2817_v1, %v2216_v57  ;;  %v2114_v52 = vpack.c.bf16 %v2097_v54, %v2096_v19  ;;  %v2829_v54 = vld [vmem:[%s3018_s17 + $0xb8] sm:$0xff] }
 0x448   : > { %v2311_v22 = vmax.f32 %v2279_v8, 0.0  ;;  %2719 = vmatmul.msk.bf16.gmra.mxu3 %vm585_vm0, %v2114_v52 }
 0x44a   : > { %2343 = vst [vmem:[%s3933_s15 + $0x58] sm:$0xff] %v2311_v22  ;;  %v2830_v22 = vld [vmem:[%s3018_s17 + $0xc0] sm:$0xff] }
 0x44b   : > { %v2218_v50 = vpop.f32.mrf.mxu3 }
 0x44c   : > { %v2219_v51 = vadd.f32 %v3919_v44, %v2218_v50 }
 0x44e   : > { %v2280_v53 = vadd.f32 %v2818_v32, %v2219_v51 }
 0x450   : > { %v2312_v25 = vmax.f32 %v2280_v53, 0.0 }
 0x452   : > { %2344 = vst [vmem:[%s3933_s15 + $0x60] sm:$0xff] %v2312_v25  ;;  %v2831_v25 = vld [vmem:[%s3018_s17 + $0xc8] sm:$0xff] }
 0x453   : > { %v2220_v49 = vpop.f32.mrf.mxu3 }
 0x454   : > { %v2221_v10 = vadd.f32 %v3919_v44, %v2220_v49 }
 0x456   : > { %v2281_v29 = vadd.f32 %v2819_v0, %v2221_v10 }
 0x458   : > { %v2313_v21 = vmax.f32 %v2281_v29, 0.0  ;;  %2720 = vmatmul.msk.bf16.gmra.mxu3 %vm585_vm0, %v2115_v16  ;;  %v2828_v16 = vld [vmem:[%s3018_s17 + $0xb0] sm:$0xff] }
 0x45a   : > { %2345 = vst [vmem:[%s3933_s15 + $0x68] sm:$0xff] %v2313_v21  ;;  %v2832_v21 = vld [vmem:[%s3018_s17 + $0xd0] sm:$0xff] }
 0x45b   : > { %v2223_v59 = vpop.f32.mrf.mxu3 }
 0x45c   : > { %v2224_v45 = vadd.f32 %v3919_v44, %v2223_v59 }
 0x45e   : > { %v2282_v63 = vadd.f32 %v2820_v9, %v2224_v45 }
 0x460   : > { %v2314_v41 = vmax.f32 %v2282_v63, 0.0 }
 0x462   : > { %2346 = vst [vmem:[%s3933_s15 + $0x70] sm:$0xff] %v2314_v41  ;;  %v2833_v41 = vld [vmem:[%s3018_s17 + $0xd8] sm:$0xff] }
 0x463   : > { %v2225_v20 = vpop.f32.mrf.mxu3 }
 0x464   : > { %v2226_v17 = vadd.f32 %v3919_v44, %v2225_v20 }
 0x466   : > { %v2283_v34 = vadd.f32 %v2821_v27, %v2226_v17 }
 0x468   : > { %v2315_v24 = vmax.f32 %v2283_v34, 0.0 }
 0x46a   : > { %2347 = vst [vmem:[%s3933_s15 + $0x78] sm:$0xff] %v2315_v24  ;;  %v2834_v24 = vld [vmem:[%s3018_s17 + $0xe0] sm:$0xff] }
 0x46b   : > { %v2228_v37 = vpop.f32.mrf.mxu3 }
 0x46c   : > { %v2229_v61 = vadd.f32 %v3919_v44, %v2228_v37 }
 0x46e   : > { %v2284_v56 = vadd.f32 %v2822_v28, %v2229_v61 }
 0x470   : > { %v2316_v26 = vmax.f32 %v2284_v56, 0.0 }
 0x472   : > { %2348 = vst [vmem:[%s3933_s15 + $0x80] sm:$0xff] %v2316_v26  ;;  %v2835_v26 = vld [vmem:[%s3018_s17 + $0xe8] sm:$0xff] }
 0x473   : > { %v2230_v33 = vpop.f32.mrf.mxu3 }
 0x474   : > { %v2231_v42 = vadd.f32 %v3919_v44, %v2230_v33 }
 0x476   : > { %v2285_v55 = vadd.f32 %v2823_v35, %v2231_v42 }
 0x478   : > { %v2317_v30 = vmax.f32 %v2285_v55, 0.0 }
 0x47a   : > { %2349 = vst [vmem:[%s3933_s15 + $0x88] sm:$0xff] %v2317_v30  ;;  %v2836_v30 = vld [vmem:[%s3018_s17 + $0xf0] sm:$0xff] }
 0x47b   : > { %v2233_v60 = vpop.f32.mrf.mxu3 }
 0x47c   : > { %v2234_v39 = vadd.f32 %v3919_v44, %v2233_v60 }
 0x47e   : > { %v2286_v47 = vadd.f32 %v2824_v36, %v2234_v39 }
 0x480   : > { %v2318_v58 = vmax.f32 %v2286_v47, 0.0 }
 0x482   : > { %2350 = vst [vmem:[%s3933_s15 + $0x90] sm:$0xff] %v2318_v58  ;;  %v2837_v58 = vld [vmem:[%s3018_s17 + $0xf8] sm:$0xff] }
 0x483   : > { %v2235_v15 = vpop.f32.mrf.mxu3 }
 0x484   : > { %v2236_v4 = vadd.f32 %v3919_v44, %v2235_v15 }
 0x486   : > { %v2287_v3 = vadd.f32 %v2825_v48, %v2236_v4 }
 0x488   : > { %v2319_v7 = vmax.f32 %v2287_v3, 0.0 }
 0x48a   : > { %2351 = vst [vmem:[%s3933_s15 + $0x98] sm:$0xff] %v2319_v7 }
 0x48b   : > { %v2238_v6 = vpop.f32.mrf.mxu3 }
 0x48c   : > { %v2239_v18 = vadd.f32 %v3919_v44, %v2238_v6 }
 0x48e   : > { %v2288_v2 = vadd.f32 %v2826_v46, %v2239_v18 }
 0x490   : > { %v2320_v11 = vmax.f32 %v2288_v2, 0.0 }
 0x492   : > { %2352 = vst [vmem:[%s3933_s15 + $0xa0] sm:$0xff] %v2320_v11 }
 0x493   : > { %v2240_v14 = vpop.f32.mrf.mxu3 }
 0x494   : > { %v2241_v23 = vadd.f32 %v3919_v44, %v2240_v14 }
 0x496   : > { %v2289_v38 = vadd.f32 %v2827_v43, %v2241_v23 }
 0x498   : > { %v2321_v5 = vmax.f32 %v2289_v38, 0.0 }
 0x49a   : > { %2353 = vst [vmem:[%s3933_s15 + $0xa8] sm:$0xff] %v2321_v5 }
 0x49b   : > { %v2243_v40 = vpop.f32.mrf.mxu3 }
 0x49c   : > { %v2244_v13 = vadd.f32 %v3919_v44, %v2243_v40 }
 0x49e   : > { %v2290_v31 = vadd.f32 %v2828_v16, %v2244_v13 }
 0x4a0   : > { %v2322_v12 = vmax.f32 %v2290_v31, 0.0 }
 0x4a2   : > { %2354 = vst [vmem:[%s3933_s15 + $0xb0] sm:$0xff] %v2322_v12 }
 0x4a3   : > { %v2245_v62 = vpop.f32.mrf.mxu3 }
 0x4a4   : > { %v2246_v19 = vadd.f32 %v3919_v44, %v2245_v62 }
 0x4a6   : > { %v2291_v57 = vadd.f32 %v2829_v54, %v2246_v19 }
 0x4a8   : > { %v2323_v1 = vmax.f32 %v2291_v57, 0.0 }
 0x4aa   : > { %2355 = vst [vmem:[%s3933_s15 + $0xb8] sm:$0xff] %v2323_v1 }
 0x4ab   : > { %v2248_v8 = vpop.f32.mrf.mxu3 }
 0x4ac   : > { %v2249_v52 = vadd.f32 %v3919_v44, %v2248_v8 }
 0x4ae   : > { %v2292_v50 = vadd.f32 %v2830_v22, %v2249_v52 }
 0x4b0   : > { %v2324_v51 = vmax.f32 %v2292_v50, 0.0 }
 0x4b2   : > { %2356 = vst [vmem:[%s3933_s15 + $0xc0] sm:$0xff] %v2324_v51 }
 0x4b3   : > { %v2250_v32 = vpop.f32.mrf.mxu3 }
 0x4b4   : > { %v2251_v53 = vadd.f32 %v3919_v44, %v2250_v32 }
 0x4b6   : > { %v2293_v49 = vadd.f32 %v2831_v25, %v2251_v53 }
 0x4b8   : > { %v2325_v10 = vmax.f32 %v2293_v49, 0.0 }
 0x4ba   : > { %2357 = vst [vmem:[%s3933_s15 + $0xc8] sm:$0xff] %v2325_v10 }
 0x4bb   : > { %v2253_v0 = vpop.f32.mrf.mxu3 }
 0x4bc   : > { %v2254_v29 = vadd.f32 %v3919_v44, %v2253_v0 }
 0x4be   : > { %v2294_v59 = vadd.f32 %v2832_v21, %v2254_v29 }
 0x4c0   : > { %v2326_v45 = vmax.f32 %v2294_v59, 0.0 }
 0x4c2   : > { %2358 = vst [vmem:[%s3933_s15 + $0xd0] sm:$0xff] %v2326_v45 }
 0x4c3   : > { %v2255_v9 = vpop.f32.mrf.mxu3 }
 0x4c4   : > { %v2256_v63 = vadd.f32 %v3919_v44, %v2255_v9 }
 0x4c6   : > { %v2295_v20 = vadd.f32 %v2833_v41, %v2256_v63 }
 0x4c8   : > { %v2327_v17 = vmax.f32 %v2295_v20, 0.0 }
 0x4ca   : > { %2359 = vst [vmem:[%s3933_s15 + $0xd8] sm:$0xff] %v2327_v17 }
 0x4cb   : > { %v2258_v27 = vpop.f32.mrf.mxu3 }
 0x4cc   : > { %v2259_v34 = vadd.f32 %v3919_v44, %v2258_v27 }
 0x4ce   : > { %v2296_v37 = vadd.f32 %v2834_v24, %v2259_v34 }
 0x4d0   : > { %v2328_v61 = vmax.f32 %v2296_v37, 0.0 }
 0x4d2   : > { %2360 = vst [vmem:[%s3933_s15 + $0xe0] sm:$0xff] %v2328_v61 }
 0x4d3   : > { %v2260_v28 = vpop.f32.mrf.mxu3 }
 0x4d4   : > { %v2261_v56 = vadd.f32 %v3919_v44, %v2260_v28 }
 0x4d6   : > { %v2297_v33 = vadd.f32 %v2835_v26, %v2261_v56 }
 0x4d8   : > { %v2329_v42 = vmax.f32 %v2297_v33, 0.0 }
 0x4da   : > { %2361 = vst [vmem:[%s3933_s15 + $0xe8] sm:$0xff] %v2329_v42 }
 0x4db   : > { %v2263_v35 = vpop.f32.mrf.mxu3 }
 0x4dc   : > { %v2264_v55 = vadd.f32 %v3919_v44, %v2263_v35 }
 0x4de   : > { %v2298_v60 = vadd.f32 %v2836_v30, %v2264_v55 }
 0x4e0   : > { %v2330_v39 = vmax.f32 %v2298_v60, 0.0 }
 0x4e2   : > { %2362 = vst [vmem:[%s3933_s15 + $0xf0] sm:$0xff] %v2330_v39 }
 0x4e3   : > { %v2265_v36 = vpop.f32.mrf.mxu3 }
 0x4e4   : > { %v2266_v47 = vadd.f32 %v3919_v44, %v2265_v36 }
 0x4e6   : > { %v2299_v15 = vadd.f32 %v2837_v58, %v2266_v47 }
 0x4e8   : > { %v2331_v4 = vmax.f32 %v2299_v15, 0.0 }
 0x4ea   : > { %2363 = vst [vmem:[%s3933_s15 + $0xf8] sm:$0xff] %v2331_v4 }
 0x4eb   : > { %2865 = shalt.err (!%p2862_p3)
}
 0x4ec   : > { %s2902_s13 = smov 128   ;;  %s2903_s15 = smov 8  }
 0x4ed   : > { %2762 = dma.vmem_to_hbm [thread:$0]  (%p2982_p5), %s2378_s21, 4096, %s2380_s22, %s2365_s28, %s2902_s13, %s2902_s13, %s2903_s15  }
 0x4ee PF: > { %p2768_p4 = scmp.ge.s32.totalorder %s2900_s27, 2  ;;  %s2394_s18 = sand.u32 1, %s2888_s24  }
 0x4ef   : > { %s2395_s19 = scalar_lea.sflag [#allocation3], %s2394_s18 }
 0x4f0   : > { %p2765_p7 = pnand %p2768_p4, %p2986_p6 }
 0x4f2   : > { %p2766_p8 = pneg %p2765_p7 }
 0x4f4   : > { %2883 = dma.done.wait (%p2766_p8), %s2395_s19, 4096  }
 0x4f5   : > { %2885 = vsyncadd (%p2766_p8), %s2395_s19, 4294963200  ;;  %p17_p9 = scmp.ge.s32.totalorder %s2969_s30, 4   ;;  %s4212_s24 = smov %s2892_s25 }
 0x4f6   : > { %s4213_s25 = smov %s2896_s26  ;;  %s4214_s26 = smov %s2980_s10 }
 0x4f7   : > { %s4215_s27 = smov %s2969_s30  ;;  %19 = sbr.rel (!%p17_p9) target bundleno = 3 (0x3), region = 83 }
 0x4fc   :  { %2401 = vsyncpa [#allocation3], 1 }
 0x4fd   :  { %2403 = vsyncpa [#allocation3 + $0x1], 1 }

</bundles_post_ra>
